<compile_context>
chip_gen: v5e
topology: v5e:2x2
jax: 0.10.0
libtpu: 0.0.40
codegen_flags: <defaults>
</compile_context>

<pallas_src>
import functools
import math

import jax
import jax.numpy as jnp
from jax.experimental import pallas as pl
from jax.experimental.pallas import tpu as pltpu

_LANES = 128
_FACTOR = 4.0 / (math.pi ** 2)


# ----------------------------- atan helper ---------------------------------
def _atan(x):
    """Cephes-style float32 arctan: VPU polynomial + EUP approx reciprocals."""
    sign = jnp.where(x < 0.0, jnp.float32(-1.0), jnp.float32(1.0))
    a = jnp.abs(x)
    tan3pi8 = jnp.float32(2.414213562373095)   # tan(3*pi/8)
    tanpi8 = jnp.float32(0.4142135623730950)   # tan(pi/8)
    big = a > tan3pi8
    mid = jnp.logical_and(a > tanpi8, jnp.logical_not(big))
    xb = -pl.reciprocal(jnp.maximum(a, jnp.float32(1e-30)), approx=True)
    xm = (a - 1.0) * pl.reciprocal(a + 1.0, approx=True)
    xr = jnp.where(big, xb, jnp.where(mid, xm, a))
    yoff = jnp.where(big, jnp.float32(math.pi / 2),
                     jnp.where(mid, jnp.float32(math.pi / 4), jnp.float32(0.0)))
    z = xr * xr
    p = ((jnp.float32(8.05374449538e-2) * z - jnp.float32(1.38776856032e-1)) * z
         + jnp.float32(1.99777106478e-1)) * z - jnp.float32(3.33329491539e-1)
    return sign * (yoff + xr + xr * z * p)


# ------------------------------- kernel -------------------------------------
def _ciou_kernel(pred_ref, tgt_ref, iou_ref, psum_ref, *,
                 n_valid, block_boxes, eps):
    # pred_ref / tgt_ref: (4, rows, 128) f32, coordinate-major (cx, cy, w, h).
    cx1, cy1, w1c, h1c = pred_ref[0], pred_ref[1], pred_ref[2], pred_ref[3]
    cx2, cy2, w2c, h2c = tgt_ref[0], tgt_ref[1], tgt_ref[2], tgt_ref[3]

    # cxcywh -> xyxy
    b1_x1 = cx1 - w1c * 0.5
    b1_x2 = cx1 + w1c * 0.5
    b1_y1 = cy1 - h1c * 0.5
    b1_y2 = cy1 + h1c * 0.5
    b2_x1 = cx2 - w2c * 0.5
    b2_x2 = cx2 + w2c * 0.5
    b2_y1 = cy2 - h2c * 0.5
    b2_y2 = cy2 + h2c * 0.5

    # intersection / union / IoU
    wh_x = jnp.maximum(jnp.minimum(b1_x2, b2_x2) - jnp.maximum(b1_x1, b2_x1), 0.0)
    wh_y = jnp.maximum(jnp.minimum(b1_y2, b2_y2) - jnp.maximum(b1_y1, b2_y1), 0.0)
    overlap = wh_x * wh_y
    union = w1c * h1c + w2c * h2c - overlap + eps
    ious = overlap * pl.reciprocal(union, approx=True)

    # smallest enclosing box diagonal
    cw = jnp.maximum(jnp.maximum(b1_x2, b2_x2) - jnp.minimum(b1_x1, b2_x1), 0.0)
    ch = jnp.maximum(jnp.maximum(b1_y2, b2_y2) - jnp.minimum(b1_y1, b2_y1), 0.0)
    c2 = cw * cw + ch * ch + eps

    # center distance
    dx = cx2 - cx1
    dy = cy2 - cy1
    rho2 = dx * dx + dy * dy

    # aspect-ratio consistency term
    datan = (_atan(w2c * pl.reciprocal(h2c + eps, approx=True))
             - _atan(w1c * pl.reciprocal(h1c + eps, approx=True)))
    v = _FACTOR * (datan * datan)
    # NOTE: torch computes alpha under no_grad(); forward values are identical.
    alpha = v * pl.reciprocal(v - ious + (1.0 + eps), approx=True)

    cious = ious - (rho2 * pl.reciprocal(c2, approx=True) + alpha * v)
    cious = jnp.clip(cious, -1.0, 1.0)

    iou_ref[...] = cious

    # Per-block masked partial sum of (1 - ciou).  The validity test uses the
    # GLOBAL box index: block_id * block_boxes + row * 128 + lane.
    row = jax.lax.broadcasted_iota(jnp.int32, cious.shape, 0)
    lane = jax.lax.broadcasted_iota(jnp.int32, cious.shape, 1)
    gidx = pl.program_id(0) * block_boxes + row * _LANES + lane
    psum_ref[0, 0] = jnp.sum(jnp.where(gidx < n_valid, 1.0 - cious, 0.0))


# ------------------------------- wrapper -------------------------------------
def iou_loss(pred, target, *, eps=1e-7, loss_weight=1.0, reduction="mean",
             avg_factor=None, block_boxes=8192):
    """Equivalent of IoULoss(iou_mode='ciou', bbox_format='xywh').forward.

    pred, target: (n, 4) xywh boxes. Returns (loss, iou) (return_iou=True).
    """
    # TODO(synk): element-wise `weight` path (and its all-zero early return)
    # of the reference forward is not implemented (weight=None assumed).
    n = pred.shape[0]
    assert pred.shape == (n, 4) and target.shape == (n, 4)

    boxes_per_row_group = _LANES * 8                      # keep rows % 8 == 0
    block_boxes = max(boxes_per_row_group,
                      (block_boxes // boxes_per_row_group) * boxes_per_row_group)
    npad = ((n + block_boxes - 1) // block_boxes) * block_boxes
    num_blocks = npad // block_boxes
    rows_total = npad // _LANES
    rows_block = block_boxes // _LANES

    def to_tiles(x):
        xt = x.astype(jnp.float32).T                      # (4, n) coord-major
        xt = jnp.pad(xt, ((0, 0), (0, npad - n)))         # single pad, no scatter
        return xt.reshape(4, rows_total, _LANES)

    pred_t = to_tiles(pred)
    tgt_t = to_tiles(target)

    kernel = functools.partial(_ciou_kernel, n_valid=n,
                               block_boxes=block_boxes, eps=float(eps))

    iou_tiles, psums = pl.pallas_call(
        kernel,
        grid=(num_blocks,),
        in_specs=[
            pl.BlockSpec((4, rows_block, _LANES), lambda i: (0, i, 0)),
            pl.BlockSpec((4, rows_block, _LANES), lambda i: (0, i, 0)),
        ],
        out_specs=(
            pl.BlockSpec((rows_block, _LANES), lambda i: (i, 0)),
            pl.BlockSpec((1, 1), lambda i: (i, 0),
                         memory_space=pltpu.MemorySpace.SMEM),
        ),
        out_shape=(
            jax.ShapeDtypeStruct((rows_total, _LANES), jnp.float32),
            jax.ShapeDtypeStruct((num_blocks, 1), jnp.float32),
        ),
        compiler_params=pltpu.CompilerParams(
            dimension_semantics=("parallel",)),
    )(pred_t, tgt_t)

    iou = iou_tiles.reshape(npad)[:n]
    loss_sum = jnp.sum(psums)

    if reduction == "mean":
        denom = float(avg_factor) if avg_factor is not None else float(n)
        loss = loss_weight * loss_sum / denom
    elif reduction == "sum":
        loss = loss_weight * loss_sum
    else:  # "none"
        loss = loss_weight * (1.0 - iou)
    return loss, iou


# --------------------------- pure-JAX reference ------------------------------
def _ref_iou_loss(pred, target, eps=1e-7, loss_weight=1.0):
    p = jnp.concatenate([pred[:, :2] - pred[:, 2:] * 0.5,
                         pred[:, :2] + pred[:, 2:] * 0.5], axis=-1)
    t = jnp.concatenate([target[:, :2] - target[:, 2:] * 0.5,
                         target[:, :2] + target[:, 2:] * 0.5], axis=-1)
    lt = jnp.maximum(p[:, :2], t[:, :2])
    rb = jnp.minimum(p[:, 2:], t[:, 2:])
    wh = jnp.maximum(rb - lt, 0.0)
    overlap = wh[:, 0] * wh[:, 1]
    ap = (p[:, 2] - p[:, 0]) * (p[:, 3] - p[:, 1])
    ag = (t[:, 2] - t[:, 0]) * (t[:, 3] - t[:, 1])
    union = ap + ag - overlap + eps
    ious = overlap / union
    ew = jnp.maximum(jnp.maximum(p[:, 2:], t[:, 2:])
                     - jnp.minimum(p[:, :2], t[:, :2]), 0.0)
    c2 = ew[:, 0] ** 2 + ew[:, 1] ** 2 + eps
    w1, h1 = p[:, 2] - p[:, 0], p[:, 3] - p[:, 1] + eps
    w2, h2 = t[:, 2] - t[:, 0], t[:, 3] - t[:, 1] + eps
    left = (t[:, 0] + t[:, 2] - (p[:, 0] + p[:, 2])) ** 2 / 4
    right = (t[:, 1] + t[:, 3] - (p[:, 1] + p[:, 3])) ** 2 / 4
    rho2 = left + right
    v = 4 / math.pi ** 2 * (jnp.arctan(w2 / h2) - jnp.arctan(w1 / h1)) ** 2
    alpha = v / (v - ious + (1 + eps))
    cious = jnp.clip(ious - (rho2 / c2 + alpha * v), -1.0, 1.0)
    return loss_weight * jnp.mean(1.0 - cious), cious


def _make_boxes(key, n, xy_hi, wh_hi):
    k1, k2 = jax.random.split(key)
    return jnp.concatenate(
        [jax.random.uniform(k1, (n, 2), jnp.float32, 0.0, xy_hi),
         jax.random.uniform(k2, (n, 2), jnp.float32, 1.0, wh_hi)], axis=-1)


if __name__ == "__main__":
    # Case 1: small n (not a multiple of 128) -> padding + global mask, 1 block.
    key = jax.random.PRNGKey(0)
    kp, kt = jax.random.split(key)
    n = 37
    pred = _make_boxes(kp, n, 16.0, 8.0)
    target = _make_boxes(kt, n, 16.0, 8.0)

    loss, iou = iou_loss(pred, target)
    jax.block_until_ready((loss, iou))

    ref_loss, ref_iou = _ref_iou_loss(pred, target)
    assert iou.shape == (n,)
    assert jnp.allclose(iou, ref_iou, atol=5e-3), \
        float(jnp.max(jnp.abs(iou - ref_iou)))
    assert jnp.allclose(loss, ref_loss, atol=5e-3), (float(loss), float(ref_loss))

    # Case 2: multi-block grid path (small block size) + per-block partial sums.
    n2 = 1500
    kp2, kt2 = jax.random.split(jax.random.PRNGKey(1))
    pred2 = _make_boxes(kp2, n2, 32.0, 10.0)
    target2 = _make_boxes(kt2, n2, 32.0, 10.0)

    loss2, iou2 = iou_loss(pred2, target2, block_boxes=1024)
    jax.block_until_ready((loss2, iou2))

    ref_loss2, ref_iou2 = _ref_iou_loss(pred2, target2)
    assert iou2.shape == (n2,)
    assert jnp.allclose(iou2, ref_iou2, atol=5e-3), \
        float(jnp.max(jnp.abs(iou2 - ref_iou2)))
    assert jnp.allclose(loss2, ref_loss2, atol=5e-3), \
        (float(loss2), float(ref_loss2))

    print("KERNEL_OK")
</pallas_src>

<mosaic_0001>
module attributes {stable_mosaic.version = 11 : i64} {
  func.func @_ciou_kernel(%arg0: i32, %arg1: memref<4x64x128xf32, #tpu.memory_space<vmem>>, %arg2: memref<4x64x128xf32, #tpu.memory_space<vmem>>, %arg3: memref<64x128xf32, #tpu.memory_space<vmem>>, %arg4: memref<1x1xf32, #tpu.memory_space<smem>>) attributes {dimension_semantics = [#tpu.dimension_semantics<parallel>], iteration_bounds = array<i64: 1>, scalar_prefetch = 0 : i64, scratch_operands = 0 : i64, tpu.core_type = #tpu.core_type<tc>, window_params = [{transform_indices = @transform_0, window_bounds = array<i64: 4, 64, 128>}, {transform_indices = @transform_1, window_bounds = array<i64: 4, 64, 128>}, {transform_indices = @transform_2, window_bounds = array<i64: 64, 128>}, {transform_indices = @transform_3, window_bounds = array<i64: 1, 1>}]} {
    %c0 = arith.constant 0 : index
    %c0_0 = arith.constant 0 : index
    %c0_1 = arith.constant 0 : index
    %0 = vector.load %arg1[%c0, %c0_0, %c0_1] : memref<4x64x128xf32, #tpu.memory_space<vmem>>, vector<1x64x128xf32>
    %1 = vector.shape_cast %0 : vector<1x64x128xf32> to vector<64x128xf32>
    %c1 = arith.constant 1 : index
    %c0_2 = arith.constant 0 : index
    %c0_3 = arith.constant 0 : index
    %2 = vector.load %arg1[%c1, %c0_2, %c0_3] : memref<4x64x128xf32, #tpu.memory_space<vmem>>, vector<1x64x128xf32>
    %3 = vector.shape_cast %2 : vector<1x64x128xf32> to vector<64x128xf32>
    %c2 = arith.constant 2 : index
    %c0_4 = arith.constant 0 : index
    %c0_5 = arith.constant 0 : index
    %4 = vector.load %arg1[%c2, %c0_4, %c0_5] : memref<4x64x128xf32, #tpu.memory_space<vmem>>, vector<1x64x128xf32>
    %5 = vector.shape_cast %4 : vector<1x64x128xf32> to vector<64x128xf32>
    %c3 = arith.constant 3 : index
    %c0_6 = arith.constant 0 : index
    %c0_7 = arith.constant 0 : index
    %6 = vector.load %arg1[%c3, %c0_6, %c0_7] : memref<4x64x128xf32, #tpu.memory_space<vmem>>, vector<1x64x128xf32>
    %7 = vector.shape_cast %6 : vector<1x64x128xf32> to vector<64x128xf32>
    %c0_8 = arith.constant 0 : index
    %c0_9 = arith.constant 0 : index
    %c0_10 = arith.constant 0 : index
    %8 = vector.load %arg2[%c0_8, %c0_9, %c0_10] : memref<4x64x128xf32, #tpu.memory_space<vmem>>, vector<1x64x128xf32>
    %9 = vector.shape_cast %8 : vector<1x64x128xf32> to vector<64x128xf32>
    %c1_11 = arith.constant 1 : index
    %c0_12 = arith.constant 0 : index
    %c0_13 = arith.constant 0 : index
    %10 = vector.load %arg2[%c1_11, %c0_12, %c0_13] : memref<4x64x128xf32, #tpu.memory_space<vmem>>, vector<1x64x128xf32>
    %11 = vector.shape_cast %10 : vector<1x64x128xf32> to vector<64x128xf32>
    %c2_14 = arith.constant 2 : index
    %c0_15 = arith.constant 0 : index
    %c0_16 = arith.constant 0 : index
    %12 = vector.load %arg2[%c2_14, %c0_15, %c0_16] : memref<4x64x128xf32, #tpu.memory_space<vmem>>, vector<1x64x128xf32>
    %13 = vector.shape_cast %12 : vector<1x64x128xf32> to vector<64x128xf32>
    %c3_17 = arith.constant 3 : index
    %c0_18 = arith.constant 0 : index
    %c0_19 = arith.constant 0 : index
    %14 = vector.load %arg2[%c3_17, %c0_18, %c0_19] : memref<4x64x128xf32, #tpu.memory_space<vmem>>, vector<1x64x128xf32>
    %15 = vector.shape_cast %14 : vector<1x64x128xf32> to vector<64x128xf32>
    %cst = arith.constant 5.000000e-01 : f32
    %16 = vector.broadcast %cst : f32 to vector<64x128xf32>
    %17 = arith.mulf %5, %16 : vector<64x128xf32>
    %18 = arith.subf %1, %17 : vector<64x128xf32>
    %cst_20 = arith.constant 5.000000e-01 : f32
    %19 = vector.broadcast %cst_20 : f32 to vector<64x128xf32>
    %20 = arith.mulf %5, %19 : vector<64x128xf32>
    %21 = arith.addf %1, %20 : vector<64x128xf32>
    %cst_21 = arith.constant 5.000000e-01 : f32
    %22 = vector.broadcast %cst_21 : f32 to vector<64x128xf32>
    %23 = arith.mulf %7, %22 : vector<64x128xf32>
    %24 = arith.subf %3, %23 : vector<64x128xf32>
    %cst_22 = arith.constant 5.000000e-01 : f32
    %25 = vector.broadcast %cst_22 : f32 to vector<64x128xf32>
    %26 = arith.mulf %7, %25 : vector<64x128xf32>
    %27 = arith.addf %3, %26 : vector<64x128xf32>
    %cst_23 = arith.constant 5.000000e-01 : f32
    %28 = vector.broadcast %cst_23 : f32 to vector<64x128xf32>
    %29 = arith.mulf %13, %28 : vector<64x128xf32>
    %30 = arith.subf %9, %29 : vector<64x128xf32>
    %cst_24 = arith.constant 5.000000e-01 : f32
    %31 = vector.broadcast %cst_24 : f32 to vector<64x128xf32>
    %32 = arith.mulf %13, %31 : vector<64x128xf32>
    %33 = arith.addf %9, %32 : vector<64x128xf32>
    %cst_25 = arith.constant 5.000000e-01 : f32
    %34 = vector.broadcast %cst_25 : f32 to vector<64x128xf32>
    %35 = arith.mulf %15, %34 : vector<64x128xf32>
    %36 = arith.subf %11, %35 : vector<64x128xf32>
    %cst_26 = arith.constant 5.000000e-01 : f32
    %37 = vector.broadcast %cst_26 : f32 to vector<64x128xf32>
    %38 = arith.mulf %15, %37 : vector<64x128xf32>
    %39 = arith.addf %11, %38 : vector<64x128xf32>
    %40 = arith.minimumf %21, %33 : vector<64x128xf32>
    %41 = arith.maximumf %18, %30 : vector<64x128xf32>
    %42 = arith.subf %40, %41 : vector<64x128xf32>
    %cst_27 = arith.constant 0.000000e+00 : f32
    %43 = vector.broadcast %cst_27 : f32 to vector<64x128xf32>
    %44 = arith.maximumf %42, %43 : vector<64x128xf32>
    %45 = arith.minimumf %27, %39 : vector<64x128xf32>
    %46 = arith.maximumf %24, %36 : vector<64x128xf32>
    %47 = arith.subf %45, %46 : vector<64x128xf32>
    %cst_28 = arith.constant 0.000000e+00 : f32
    %48 = vector.broadcast %cst_28 : f32 to vector<64x128xf32>
    %49 = arith.maximumf %47, %48 : vector<64x128xf32>
    %50 = arith.mulf %44, %49 : vector<64x128xf32>
    %51 = arith.mulf %5, %7 : vector<64x128xf32>
    %52 = arith.mulf %13, %15 : vector<64x128xf32>
    %53 = arith.addf %51, %52 : vector<64x128xf32>
    %54 = arith.subf %53, %50 : vector<64x128xf32>
    %cst_29 = arith.constant 1.000000e-07 : f32
    %55 = vector.broadcast %cst_29 : f32 to vector<64x128xf32>
    %56 = arith.addf %54, %55 : vector<64x128xf32>
    %57 = tpu.reciprocal %56 {approx = true} : vector<64x128xf32> -> vector<64x128xf32>
    %58 = arith.mulf %50, %57 : vector<64x128xf32>
    %59 = arith.maximumf %21, %33 : vector<64x128xf32>
    %60 = arith.minimumf %18, %30 : vector<64x128xf32>
    %61 = arith.subf %59, %60 : vector<64x128xf32>
    %cst_30 = arith.constant 0.000000e+00 : f32
    %62 = vector.broadcast %cst_30 : f32 to vector<64x128xf32>
    %63 = arith.maximumf %61, %62 : vector<64x128xf32>
    %64 = arith.maximumf %27, %39 : vector<64x128xf32>
    %65 = arith.minimumf %24, %36 : vector<64x128xf32>
    %66 = arith.subf %64, %65 : vector<64x128xf32>
    %cst_31 = arith.constant 0.000000e+00 : f32
    %67 = vector.broadcast %cst_31 : f32 to vector<64x128xf32>
    %68 = arith.maximumf %66, %67 : vector<64x128xf32>
    %69 = arith.mulf %63, %63 : vector<64x128xf32>
    %70 = arith.mulf %68, %68 : vector<64x128xf32>
    %71 = arith.addf %69, %70 : vector<64x128xf32>
    %cst_32 = arith.constant 1.000000e-07 : f32
    %72 = vector.broadcast %cst_32 : f32 to vector<64x128xf32>
    %73 = arith.addf %71, %72 : vector<64x128xf32>
    %74 = arith.subf %9, %1 : vector<64x128xf32>
    %75 = arith.subf %11, %3 : vector<64x128xf32>
    %76 = arith.mulf %74, %74 : vector<64x128xf32>
    %77 = arith.mulf %75, %75 : vector<64x128xf32>
    %78 = arith.addf %76, %77 : vector<64x128xf32>
    %cst_33 = arith.constant 1.000000e-07 : f32
    %79 = vector.broadcast %cst_33 : f32 to vector<64x128xf32>
    %80 = arith.addf %15, %79 : vector<64x128xf32>
    %81 = tpu.reciprocal %80 {approx = true} : vector<64x128xf32> -> vector<64x128xf32>
    %82 = arith.mulf %13, %81 : vector<64x128xf32>
    %cst_34 = arith.constant 0.000000e+00 : f32
    %83 = vector.broadcast %cst_34 : f32 to vector<64x128xf32>
    %84 = arith.cmpf olt, %82, %83 : vector<64x128xf32>
    %cst_35 = arith.constant -1.000000e+00 : f32
    %cst_36 = arith.constant 1.000000e+00 : f32
    %85 = vector.broadcast %cst_35 : f32 to vector<64x128xf32>
    %86 = vector.broadcast %cst_36 : f32 to vector<64x128xf32>
    %87 = arith.select %84, %85, %86 : vector<64x128xi1>, vector<64x128xf32>
    %88 = math.absf %82 : vector<64x128xf32>
    %cst_37 = arith.constant 2.41421366 : f32
    %89 = vector.broadcast %cst_37 : f32 to vector<64x128xf32>
    %90 = arith.cmpf ogt, %88, %89 : vector<64x128xf32>
    %cst_38 = arith.constant 0.414213568 : f32
    %91 = vector.broadcast %cst_38 : f32 to vector<64x128xf32>
    %92 = arith.cmpf ogt, %88, %91 : vector<64x128xf32>
    %cst_39 = arith.constant dense<true> : vector<64x128xi1>
    %93 = arith.xori %90, %cst_39 : vector<64x128xi1>
    %94 = arith.andi %92, %93 : vector<64x128xi1>
    %cst_40 = arith.constant 1.000000e-30 : f32
    %95 = vector.broadcast %cst_40 : f32 to vector<64x128xf32>
    %96 = arith.maximumf %88, %95 : vector<64x128xf32>
    %97 = tpu.reciprocal %96 {approx = true} : vector<64x128xf32> -> vector<64x128xf32>
    %cst_41 = arith.constant 0.000000e+00 : f32
    %98 = vector.broadcast %cst_41 : f32 to vector<64x128xf32>
    %99 = arith.subf %98, %97 : vector<64x128xf32>
    %cst_42 = arith.constant 1.000000e+00 : f32
    %100 = vector.broadcast %cst_42 : f32 to vector<64x128xf32>
    %101 = arith.subf %88, %100 : vector<64x128xf32>
    %cst_43 = arith.constant 1.000000e+00 : f32
    %102 = vector.broadcast %cst_43 : f32 to vector<64x128xf32>
    %103 = arith.addf %88, %102 : vector<64x128xf32>
    %104 = tpu.reciprocal %103 {approx = true} : vector<64x128xf32> -> vector<64x128xf32>
    %105 = arith.mulf %101, %104 : vector<64x128xf32>
    %106 = arith.select %94, %105, %88 : vector<64x128xi1>, vector<64x128xf32>
    %107 = arith.select %90, %99, %106 : vector<64x128xi1>, vector<64x128xf32>
    %cst_44 = arith.constant 0.785398185 : f32
    %cst_45 = arith.constant 0.000000e+00 : f32
    %108 = vector.broadcast %cst_44 : f32 to vector<64x128xf32>
    %109 = vector.broadcast %cst_45 : f32 to vector<64x128xf32>
    %110 = arith.select %94, %108, %109 : vector<64x128xi1>, vector<64x128xf32>
    %cst_46 = arith.constant 1.57079637 : f32
    %111 = vector.broadcast %cst_46 : f32 to vector<64x128xf32>
    %112 = arith.select %90, %111, %110 : vector<64x128xi1>, vector<64x128xf32>
    %113 = arith.mulf %107, %107 : vector<64x128xf32>
    %cst_47 = arith.constant 0.0805374458 : f32
    %114 = vector.broadcast %cst_47 : f32 to vector<64x128xf32>
    %115 = arith.mulf %114, %113 : vector<64x128xf32>
    %cst_48 = arith.constant 0.138776854 : f32
    %116 = vector.broadcast %cst_48 : f32 to vector<64x128xf32>
    %117 = arith.subf %115, %116 : vector<64x128xf32>
    %118 = arith.mulf %117, %113 : vector<64x128xf32>
    %cst_49 = arith.constant 0.199777111 : f32
    %119 = vector.broadcast %cst_49 : f32 to vector<64x128xf32>
    %120 = arith.addf %118, %119 : vector<64x128xf32>
    %121 = arith.mulf %120, %113 : vector<64x128xf32>
    %cst_50 = arith.constant 0.333329499 : f32
    %122 = vector.broadcast %cst_50 : f32 to vector<64x128xf32>
    %123 = arith.subf %121, %122 : vector<64x128xf32>
    %124 = arith.addf %112, %107 : vector<64x128xf32>
    %125 = arith.mulf %107, %113 : vector<64x128xf32>
    %126 = arith.mulf %125, %123 : vector<64x128xf32>
    %127 = arith.addf %124, %126 : vector<64x128xf32>
    %128 = arith.mulf %87, %127 : vector<64x128xf32>
    %cst_51 = arith.constant 1.000000e-07 : f32
    %129 = vector.broadcast %cst_51 : f32 to vector<64x128xf32>
    %130 = arith.addf %7, %129 : vector<64x128xf32>
    %131 = tpu.reciprocal %130 {approx = true} : vector<64x128xf32> -> vector<64x128xf32>
    %132 = arith.mulf %5, %131 : vector<64x128xf32>
    %cst_52 = arith.constant 0.000000e+00 : f32
    %133 = vector.broadcast %cst_52 : f32 to vector<64x128xf32>
    %134 = arith.cmpf olt, %132, %133 : vector<64x128xf32>
    %cst_53 = arith.constant -1.000000e+00 : f32
    %cst_54 = arith.constant 1.000000e+00 : f32
    %135 = vector.broadcast %cst_53 : f32 to vector<64x128xf32>
    %136 = vector.broadcast %cst_54 : f32 to vector<64x128xf32>
    %137 = arith.select %134, %135, %136 : vector<64x128xi1>, vector<64x128xf32>
    %138 = math.absf %132 : vector<64x128xf32>
    %cst_55 = arith.constant 2.41421366 : f32
    %139 = vector.broadcast %cst_55 : f32 to vector<64x128xf32>
    %140 = arith.cmpf ogt, %138, %139 : vector<64x128xf32>
    %cst_56 = arith.constant 0.414213568 : f32
    %141 = vector.broadcast %cst_56 : f32 to vector<64x128xf32>
    %142 = arith.cmpf ogt, %138, %141 : vector<64x128xf32>
    %cst_57 = arith.constant dense<true> : vector<64x128xi1>
    %143 = arith.xori %140, %cst_57 : vector<64x128xi1>
    %144 = arith.andi %142, %143 : vector<64x128xi1>
    %cst_58 = arith.constant 1.000000e-30 : f32
    %145 = vector.broadcast %cst_58 : f32 to vector<64x128xf32>
    %146 = arith.maximumf %138, %145 : vector<64x128xf32>
    %147 = tpu.reciprocal %146 {approx = true} : vector<64x128xf32> -> vector<64x128xf32>
    %cst_59 = arith.constant 0.000000e+00 : f32
    %148 = vector.broadcast %cst_59 : f32 to vector<64x128xf32>
    %149 = arith.subf %148, %147 : vector<64x128xf32>
    %cst_60 = arith.constant 1.000000e+00 : f32
    %150 = vector.broadcast %cst_60 : f32 to vector<64x128xf32>
    %151 = arith.subf %138, %150 : vector<64x128xf32>
    %cst_61 = arith.constant 1.000000e+00 : f32
    %152 = vector.broadcast %cst_61 : f32 to vector<64x128xf32>
    %153 = arith.addf %138, %152 : vector<64x128xf32>
    %154 = tpu.reciprocal %153 {approx = true} : vector<64x128xf32> -> vector<64x128xf32>
    %155 = arith.mulf %151, %154 : vector<64x128xf32>
    %156 = arith.select %144, %155, %138 : vector<64x128xi1>, vector<64x128xf32>
    %157 = arith.select %140, %149, %156 : vector<64x128xi1>, vector<64x128xf32>
    %cst_62 = arith.constant 0.785398185 : f32
    %cst_63 = arith.constant 0.000000e+00 : f32
    %158 = vector.broadcast %cst_62 : f32 to vector<64x128xf32>
    %159 = vector.broadcast %cst_63 : f32 to vector<64x128xf32>
    %160 = arith.select %144, %158, %159 : vector<64x128xi1>, vector<64x128xf32>
    %cst_64 = arith.constant 1.57079637 : f32
    %161 = vector.broadcast %cst_64 : f32 to vector<64x128xf32>
    %162 = arith.select %140, %161, %160 : vector<64x128xi1>, vector<64x128xf32>
    %163 = arith.mulf %157, %157 : vector<64x128xf32>
    %cst_65 = arith.constant 0.0805374458 : f32
    %164 = vector.broadcast %cst_65 : f32 to vector<64x128xf32>
    %165 = arith.mulf %164, %163 : vector<64x128xf32>
    %cst_66 = arith.constant 0.138776854 : f32
    %166 = vector.broadcast %cst_66 : f32 to vector<64x128xf32>
    %167 = arith.subf %165, %166 : vector<64x128xf32>
    %168 = arith.mulf %167, %163 : vector<64x128xf32>
    %cst_67 = arith.constant 0.199777111 : f32
    %169 = vector.broadcast %cst_67 : f32 to vector<64x128xf32>
    %170 = arith.addf %168, %169 : vector<64x128xf32>
    %171 = arith.mulf %170, %163 : vector<64x128xf32>
    %cst_68 = arith.constant 0.333329499 : f32
    %172 = vector.broadcast %cst_68 : f32 to vector<64x128xf32>
    %173 = arith.subf %171, %172 : vector<64x128xf32>
    %174 = arith.addf %162, %157 : vector<64x128xf32>
    %175 = arith.mulf %157, %163 : vector<64x128xf32>
    %176 = arith.mulf %175, %173 : vector<64x128xf32>
    %177 = arith.addf %174, %176 : vector<64x128xf32>
    %178 = arith.mulf %137, %177 : vector<64x128xf32>
    %179 = arith.subf %128, %178 : vector<64x128xf32>
    %180 = arith.mulf %179, %179 : vector<64x128xf32>
    %cst_69 = arith.constant 0.405284733 : f32
    %181 = vector.broadcast %cst_69 : f32 to vector<64x128xf32>
    %182 = arith.mulf %181, %180 : vector<64x128xf32>
    %183 = arith.subf %182, %58 : vector<64x128xf32>
    %cst_70 = arith.constant 1.00000012 : f32
    %184 = vector.broadcast %cst_70 : f32 to vector<64x128xf32>
    %185 = arith.addf %183, %184 : vector<64x128xf32>
    %186 = tpu.reciprocal %185 {approx = true} : vector<64x128xf32> -> vector<64x128xf32>
    %187 = arith.mulf %182, %186 : vector<64x128xf32>
    %188 = tpu.reciprocal %73 {approx = true} : vector<64x128xf32> -> vector<64x128xf32>
    %189 = arith.mulf %78, %188 : vector<64x128xf32>
    %190 = arith.mulf %187, %182 : vector<64x128xf32>
    %191 = arith.addf %189, %190 : vector<64x128xf32>
    %192 = arith.subf %58, %191 : vector<64x128xf32>
    %cst_71 = arith.constant -1.000000e+00 : f32
    %cst_72 = arith.constant 1.000000e+00 : f32
    %193 = vector.broadcast %cst_71 : f32 to vector<64x128xf32>
    %194 = arith.maximumf %193, %192 : vector<64x128xf32>
    %195 = vector.broadcast %cst_72 : f32 to vector<64x128xf32>
    %196 = arith.minimumf %195, %194 : vector<64x128xf32>
    %c0_73 = arith.constant 0 : index
    %c0_74 = arith.constant 0 : index
    %197 = vector.load %arg3[%c0_73, %c0_74] : memref<64x128xf32, #tpu.memory_space<vmem>>, vector<64x128xf32>
    tpu.vector_store %arg3[%c0_73, %c0_74], %196 {strides = array<i32>} : memref<64x128xf32, #tpu.memory_space<vmem>>, vector<64x128xf32>,
    %198 = tpu.iota {dimensions = array<i32: 0>} : vector<64x128xi32>
    %199 = tpu.iota {dimensions = array<i32: 1>} : vector<64x128xi32>
    %c8192_i32 = arith.constant 8192 : i32
    %200 = arith.muli %arg0, %c8192_i32 : i32
    %c128_i32 = arith.constant 128 : i32
    %201 = vector.broadcast %c128_i32 : i32 to vector<64x128xi32>
    %202 = arith.muli %198, %201 : vector<64x128xi32>
    %203 = vector.broadcast %200 : i32 to vector<64x128xi32>
    %204 = arith.addi %203, %202 : vector<64x128xi32>
    %205 = arith.addi %204, %199 : vector<64x128xi32>
    %c37_i32 = arith.constant 37 : i32
    %206 = vector.broadcast %c37_i32 : i32 to vector<64x128xi32>
    %207 = arith.cmpi slt, %205, %206 : vector<64x128xi32>
    %cst_75 = arith.constant 1.000000e+00 : f32
    %208 = vector.broadcast %cst_75 : f32 to vector<64x128xf32>
    %209 = arith.subf %208, %196 : vector<64x128xf32>
    %cst_76 = arith.constant 0.000000e+00 : f32
    %210 = vector.broadcast %cst_76 : f32 to vector<64x128xf32>
    %211 = arith.select %207, %209, %210 : vector<64x128xi1>, vector<64x128xf32>
    %212 = vector.shape_cast %211 : vector<64x128xf32> to vector<1x64x128xf32>
    %cst_77 = arith.constant dense<0.000000e+00> : vector<1xf32>
    %213 = vector.multi_reduction <add>, %212, %cst_77 [1, 2] : vector<1x64x128xf32> to vector<1xf32>
    %214 = vector.shape_cast %213 : vector<1xf32> to vector<1x1x1xf32>
    %215 = vector.extract %214[0, 0, 0] : f32 from vector<1x1x1xf32>
    %c0_78 = arith.constant 0 : index
    %c0_79 = arith.constant 0 : index
    %216 = memref.load %arg4[%c0_78, %c0_79] : memref<1x1xf32, #tpu.memory_space<smem>>
    memref.store %215, %arg4[%c0_78, %c0_79] : memref<1x1xf32, #tpu.memory_space<smem>>
    return
  }
  func.func @transform_0(%arg0: i32) -> (i32, i32, i32) {
    %c0_i32 = arith.constant 0 : i32
    %c0_i32_0 = arith.constant 0 : i32
    %c0_i32_1 = arith.constant 0 : i32
    return %c0_i32, %arg0, %c0_i32_0 : i32, i32, i32
  }
  func.func @transform_1(%arg0: i32) -> (i32, i32, i32) {
    %c0_i32 = arith.constant 0 : i32
    %c0_i32_0 = arith.constant 0 : i32
    %c0_i32_1 = arith.constant 0 : i32
    return %c0_i32, %arg0, %c0_i32_0 : i32, i32, i32
  }
  func.func @transform_2(%arg0: i32) -> (i32, i32) {
    %c0_i32 = arith.constant 0 : i32
    %c0_i32_0 = arith.constant 0 : i32
    return %arg0, %c0_i32 : i32, i32
  }
  func.func @transform_3(%arg0: i32) -> (i32, i32) {
    %c0_i32 = arith.constant 0 : i32
    %c0_i32_0 = arith.constant 0 : i32
    return %arg0, %c0_i32 : i32, i32
  }
}

</mosaic_0001>

<bundles_post_ra>
// kernel: tpu_custom_call.1
= control target key start
LH: loop header
LB: loop body
LE: loop exit
PB: predicated region body
PF: predicated region fallthrough
CT: control target
= control target key end

     0   :  { %9 = vsyncpa [#allocation3], 0  ;;  %s3343_s0 = inlined_call_operand.hbm [shape: f32[4,64,128], index: 0, kind: input, shape index: {}]   ;;  %s3344_s1 = inlined_call_operand.hbm [shape: f32[4,64,128], index: 1, kind: input, shape index: {}]   ;;  %s3345_s2 = inlined_call_operand.hbm [shape: f32[64,128], index: 2, kind: output, shape index: {0}]   ;;  %s3346_s3 = inlined_call_operand.hbm [shape: f32[1,1], index: 3, kind: output, shape index: {1}]  }
   0x1   :  { %10 = vsyncpa [#allocation7], 0 }
   0x2   :  { %11 = vsyncpa [#allocation4], 0 }
   0x3   :  { %12 = vsyncpa [#allocation5], 0  ;;  %s17_s14 = sshll.u32 %s3343_s0, 4  ;;  %s1550_s15 = smov [#allocation2]   ;;  %s18_s14 = int_to_ptr.hbm [resolvable:$true] %s17_s14 }
   0x4   :  { %s19_s16 = sshll.u32 %s1550_s15, 4  ;;  %s30_s19 = sshll.u32 %s3344_s1, 4  ;;  %s20_s16 = int_to_ptr.vmem [resolvable:$true] %s19_s16  ;;  %s31_s19 = int_to_ptr.hbm [resolvable:$true] %s30_s19 }
   0x5   :  { %s1551_s20 = smov 128   ;;  %s1552_s21 = smov 8  }
   0x6   :  { %25 = dma.hbm_to_vmem [thread:$0]  %s18_s14, 4096, %s20_s16, [#allocation3], %s1551_s20, %s1551_s20, %s1552_s21  }
   0x7   :  { %s1553_s22 = smov [#allocation6]  }
   0x8   :  { %s32_s23 = sshll.u32 %s1553_s22, 4  ;;  %s33_s23 = int_to_ptr.vmem [resolvable:$true] %s32_s23 }
   0x9   :  { %38 = dma.hbm_to_vmem [thread:$0]  %s31_s19, 4096, %s33_s23, [#allocation7], %s1551_s20, %s1551_s20, %s1552_s21  }
   0xa   :  { %1542 = dma.done.wait [#allocation3], 4096  }
   0xb   :  { %1543 = vsyncadd [#allocation3], 4294963200 }
   0xc   :  { %1544 = dma.done.wait [#allocation7], 4096  }
   0xd   :  { %1545 = vsyncadd [#allocation7], 4294963200  ;;  %v1591_v0 = vld [vmem:[#allocation2 + $0x80] sm:$0xff]  ;;  %v1593_v1 = vld [vmem:[#allocation2 + $0x88] sm:$0xff]  ;;  %vm3491_vm12 = vmmov 1   ;;  %s1557_s0 = smov [#allocation8]  }
   0xe   :  { %v1595_v2 = vld [vmem:[#allocation2] sm:$0xff]  ;;  %v1597_v3 = vld [vmem:[#allocation2 + $0x8] sm:$0xff]  ;;  %v1599_v4 = vld [vmem:[#allocation2 + $0x10] sm:$0xff]  ;;  %v117_v8 = vmul.f32 0.5, %v1591_v0  ;;  %v118_v12 = vmul.f32 0.5, %v1593_v1  ;;  %s1208_s1 = sshll.u32 %s1557_s0, 4  ;;  %s1209_s1 = int_to_ptr.vmem [resolvable:$true] %s1208_s1 }
   0xf   :  { %3510 = vst [vmem:[#allocation14_spill] sm:$0xff] %v1595_v2  ;;  %v1601_v5 = vld [vmem:[#allocation2 + $0x90] sm:$0xff]  ;;  %v1603_v6 = vld [vmem:[#allocation2 + $0x98] sm:$0xff]  ;;  %v1605_v7 = vld [vmem:[#allocation2 + $0xa0] sm:$0xff]  ;;  %s1210_s26 = sshll.u32 %s3345_s2, 4  ;;  %s1222_s29 = sshll.u32 %s3346_s3, 4  ;;  %s1211_s26 = int_to_ptr.hbm [resolvable:$true] %s1210_s26  ;;  %s1223_s29 = int_to_ptr.hbm [resolvable:$true] %s1222_s29 }
  0x10   :  { %3511 = vst [vmem:[#allocation15_spill] sm:$0xff] %v1597_v3  ;;  %v1608_v9 = vld [vmem:[#allocation2 + $0xa8] sm:$0xff]  ;;  %v1610_v10 = vld [vmem:[#allocation2 + $0xb0] sm:$0xff]  ;;  %v1612_v11 = vld [vmem:[#allocation2 + $0xb8] sm:$0xff]  ;;  %v119_v13 = vmul.f32 0.5, %v1601_v5  ;;  %v120_v14 = vmul.f32 0.5, %v1603_v6  ;;  %v1636_v26 = vsub.f32 %v1595_v2, %v117_v8  ;;  %v1639_v27 = vsub.f32 %v1597_v3, %v118_v12 }
  0x11   :  { %3512 = vst [vmem:[#allocation16_spill] sm:$0xff] %v1599_v4  ;;  %v1617_v15 = vld [vmem:[#allocation2 + $0x18] sm:$0xff]  ;;  %v1619_v16 = vld [vmem:[#allocation2 + $0x20] sm:$0xff]  ;;  %v121_v17 = vmul.f32 0.5, %v1605_v7  ;;  %v122_v18 = vmul.f32 0.5, %v1608_v9  ;;  %v123_v19 = vmul.f32 0.5, %v1610_v10  ;;  %v1684_v48 = vadd.f32 %v117_v8, %v1595_v2 }
  0x12   :  { %3513 = vst [vmem:[#allocation17_spill] sm:$0xff] %v1601_v5  ;;  %v124_v20 = vmul.f32 0.5, %v1612_v11  ;;  %v1625_v21 = vld [vmem:[#allocation2 + $0x28] sm:$0xff]  ;;  %v1627_v22 = vld [vmem:[#allocation2 + $0x30] sm:$0xff]  ;;  %v1629_v23 = vld [vmem:[#allocation2 + $0x38] sm:$0xff]  ;;  %v1642_v28 = vsub.f32 %v1599_v4, %v119_v13  ;;  %v1645_v29 = vsub.f32 %v1617_v15, %v120_v14  ;;  %v1696_v55 = vadd.f32 %v118_v12, %v1597_v3  ;;  %s1558_s30 = smov [#allocation9]  }
  0x13   :  { %3514 = vst [vmem:[#allocation18_spill] sm:$0xff] %v1603_v6  ;;  %v1631_v24 = vld [vmem:[#allocation2 + $0xc0] sm:$0xff]  ;;  %v1633_v25 = vld [vmem:[#allocation2 + $0xc8] sm:$0xff]  ;;  %v1651_v32 = vld [vmem:[#allocation2 + $0xd0] sm:$0xff]  ;;  %v1658_v35 = vsub.f32 %v1619_v16, %v121_v17  ;;  %v1661_v36 = vsub.f32 %v1625_v21, %v122_v18  ;;  %v1664_v37 = vsub.f32 %v1627_v22, %v123_v19  ;;  %v1699_v56 = vadd.f32 %v119_v13, %v1599_v4 }
  0x14   :  { %3515 = vst [vmem:[#allocation19_spill] sm:$0xff] %v1605_v7  ;;  %v1647_v30 = vld [vmem:[#allocation2 + $0x40] sm:$0xff]  ;;  %v1649_v31 = vld [vmem:[#allocation2 + $0x48] sm:$0xff]  ;;  %v1653_v33 = vld [vmem:[#allocation2 + $0xd8] sm:$0xff]  ;;  %v1667_v38 = vsub.f32 %v1629_v23, %v124_v20  ;;  %v141_v41 = vmul.f32 0.5, %v1631_v24  ;;  %v142_v42 = vmul.f32 0.5, %v1633_v25  ;;  %v1702_v57 = vadd.f32 %v120_v14, %v1617_v15 }
  0x15   :  { %3516 = vst [vmem:[#allocation20_spill] sm:$0xff] %v1608_v9  ;;  %v1655_v34 = vld [vmem:[#allocation2 + $0xe0] sm:$0xff]  ;;  %v1669_v39 = vld [vmem:[#allocation2 + $0xe8] sm:$0xff]  ;;  %v1671_v40 = vld [vmem:[#allocation2 + $0xf0] sm:$0xff]  ;;  %v143_v43 = vmul.f32 0.5, %v1651_v32  ;;  %v144_v44 = vmul.f32 0.5, %v1653_v33  ;;  %v1708_v60 = vadd.f32 %v121_v17, %v1619_v16  ;;  %v1711_v61 = vadd.f32 %v122_v18, %v1625_v21 }
  0x16   :  { %3517 = vst [vmem:[#allocation21_spill] sm:$0xff] %v1610_v10  ;;  %v1677_v45 = vld [vmem:[#allocation2 + $0x50] sm:$0xff]  ;;  %v1679_v46 = vld [vmem:[#allocation2 + $0x58] sm:$0xff]  ;;  %v145_v49 = vmul.f32 0.5, %v1655_v34  ;;  %v146_v50 = vmul.f32 0.5, %v1669_v39  ;;  %v147_v51 = vmul.f32 0.5, %v1671_v40  ;;  %v1714_v62 = vadd.f32 %v123_v19, %v1627_v22 }
  0x17   :  { %3518 = vst [vmem:[#allocation22_spill] sm:$0xff] %v1612_v11  ;;  %v1681_v47 = vld [vmem:[#allocation2 + $0xf8] sm:$0xff]  ;;  %v1689_v52 = vld [vmem:[#allocation2 + $0x60] sm:$0xff]  ;;  %v1691_v53 = vld [vmem:[#allocation2 + $0x68] sm:$0xff]  ;;  %v1717_v63 = vadd.f32 %v124_v20, %v1629_v23  ;;  %v1720_v8 = vsub.f32 %v1647_v30, %v141_v41  ;;  %v1723_v12 = vsub.f32 %v1649_v31, %v142_v42  ;;  %v1726_v13 = vsub.f32 %v1677_v45, %v143_v43 }
  0x18   :  { %3519 = vst [vmem:[#allocation23_spill] sm:$0xff] %v1617_v15  ;;  %v1693_v54 = vld [vmem:[#allocation2 + $0x70] sm:$0xff]  ;;  %v148_v58 = vmul.f32 0.5, %v1681_v47  ;;  %v1705_v59 = vld [vmem:[#allocation2 + $0x78] sm:$0xff]  ;;  %v1729_v14 = vsub.f32 %v1679_v46, %v144_v44  ;;  %v1731_v17 = vld [vmem:[#allocation6] sm:$0xff]  ;;  %v1751_v15 = vadd.f32 %v141_v41, %v1647_v30  ;;  %v1787_v5 = vadd.f32 %v144_v44, %v1679_v46 }
  0x19   :  { %3520 = vst [vmem:[#allocation24_spill] sm:$0xff] %v1619_v16  ;;  %v1733_v18 = vld [vmem:[#allocation6 + $0x8] sm:$0xff]  ;;  %v1735_v19 = vld [vmem:[#allocation6 + $0x80] sm:$0xff]  ;;  %v1748_v16 = vsub.f32 %v1693_v54, %v147_v51  ;;  %v1753_v4 = vld [vmem:[#allocation6 + $0x10] sm:$0xff] }
  0x1a   :  { %3521 = vst [vmem:[#allocation25_spill] sm:$0xff] %v1625_v21  ;;  %v1737_v20 = vld [vmem:[#allocation6 + $0x88] sm:$0xff]  ;;  %v1745_v21 = vsub.f32 %v1691_v53, %v146_v50  ;;  %v1755_v3 = vld [vmem:[#allocation6 + $0x98] sm:$0xff]  ;;  %v1757_v2 = vld [vmem:[#allocation6 + $0xa0] sm:$0xff]  ;;  %v1762_v11 = vsub.f32 %v1705_v59, %v148_v58  ;;  %v165_v10 = vmul.f32 0.5, %v1735_v19  ;;  %v1805_v44 = vadd.f32 %v148_v58, %v1705_v59 }
  0x1b   :  { %3522 = vst [vmem:[#allocation26_spill] sm:$0xff] %v1627_v22  ;;  %v1742_v22 = vsub.f32 %v1689_v52, %v145_v49  ;;  %v1769_v41 = vld [vmem:[#allocation6 + $0xb0] sm:$0xff]  ;;  %v169_v7 = vmul.f32 0.5, %v1757_v2  ;;  %v1777_v6 = vld [vmem:[#allocation6 + $0x18] sm:$0xff]  ;;  %v1825_v58 = vld [vmem:[#allocation6 + $0xc0] sm:$0xff] }
  0x1c   :  { %3523 = vst [vmem:[#allocation27_spill] sm:$0xff] %v1629_v23  ;;  %v1739_v23 = vld [vmem:[#allocation6 + $0x90] sm:$0xff] }
  0x1d   :  { %3524 = vst [vmem:[#allocation28_spill] sm:$0xff] %v1631_v24  ;;  %v167_v9 = vmul.f32 0.5, %v1739_v23 }
  0x1e   :  { %3525 = vst [vmem:[#allocation29_spill] sm:$0xff] %v1633_v25 }
  0x1f   :  { %3526 = vst [vmem:[#allocation30_spill] sm:$0xff] %v1642_v28 }
  0x20   :  { %3527 = vst [vmem:[#allocation31_spill] sm:$0xff] %v1645_v29 }
  0x21   :  { %3528 = vst [vmem:[#allocation32_spill] sm:$0xff] %v1647_v30  ;;  %v1771_v30 = vld [vmem:[#allocation6 + $0xb8] sm:$0xff] }
  0x22   :  { %3529 = vst [vmem:[#allocation33_spill] sm:$0xff] %v1649_v31 }
  0x23   :  { %3530 = vst [vmem:[#allocation34_spill] sm:$0xff] %v1651_v32  ;;  %v1784_v32 = vadd.f32 %v143_v43, %v1677_v45  ;;  %v1802_v43 = vadd.f32 %v147_v51, %v1693_v54  ;;  %v1823_v51 = vld [vmem:[#allocation6 + $0x48] sm:$0xff] }
  0x24   :  { %3531 = vst [vmem:[#allocation35_spill] sm:$0xff] %v1653_v33 }
  0x25   :  { %3532 = vst [vmem:[#allocation36_spill] sm:$0xff] %v1655_v34  ;;  %v168_v34 = vmul.f32 0.5, %v1755_v3 }
  0x26   :  { %3533 = vst [vmem:[#allocation37_spill] sm:$0xff] %v1658_v35 }
  0x27   :  { %3534 = vst [vmem:[#allocation38_spill] sm:$0xff] %v1661_v36 }
  0x28   :  { %3535 = vst [vmem:[#allocation39_spill] sm:$0xff] %v1664_v37 }
  0x29   :  { %3536 = vst [vmem:[#allocation40_spill] sm:$0xff] %v1667_v38 }
  0x2a   :  { %3537 = vst [vmem:[#allocation41_spill] sm:$0xff] %v1669_v39  ;;  %v166_v39 = vmul.f32 0.5, %v1737_v20 }
  0x2b   :  { %3538 = vst [vmem:[#allocation42_spill] sm:$0xff] %v1671_v40  ;;  %v1765_v40 = vadd.f32 %v142_v42, %v1649_v31  ;;  %v1779_v42 = vld [vmem:[#allocation6 + $0x20] sm:$0xff]  ;;  %v1781_v31 = vld [vmem:[#allocation6 + $0x28] sm:$0xff] }
  0x2c   :  { %3539 = vst [vmem:[#allocation43_spill] sm:$0xff] %v1677_v45  ;;  %v1811_v45 = vsub.f32 %v1733_v18, %v166_v39 }
  0x2d   :  { %3540 = vst [vmem:[#allocation44_spill] sm:$0xff] %v1679_v46  ;;  %v1808_v46 = vsub.f32 %v1731_v17, %v165_v10 }
  0x2e   :  { %3541 = vst [vmem:[#allocation45_spill] sm:$0xff] %v1681_v47  ;;  %v1759_v47 = vld [vmem:[#allocation6 + $0xa8] sm:$0xff] }
  0x2f   :  { %3542 = vst [vmem:[#allocation46_spill] sm:$0xff] %v1689_v52  ;;  %v170_v33 = vmul.f32 0.5, %v1759_v47 }
  0x30   :  { %3543 = vst [vmem:[#allocation47_spill] sm:$0xff] %v1691_v53 }
  0x31   :  { %3544 = vst [vmem:[#allocation48_spill] sm:$0xff] %v1693_v54  ;;  %v1829_v54 = vld [vmem:[#allocation6 + $0xd0] sm:$0xff] }
  0x32   :  { %3545 = vst [vmem:[#allocation49_spill] sm:$0xff] %v1705_v59  ;;  %v1827_v59 = vld [vmem:[#allocation6 + $0xc8] sm:$0xff] }
  0x33   :  { %3546 = vst [vmem:[#allocation50_spill] sm:$0xff] %v1708_v60 }
  0x34   :  { %3547 = vst [vmem:[#allocation51_spill] sm:$0xff] %v1711_v61 }
  0x35   :  { %3548 = vst [vmem:[#allocation52_spill] sm:$0xff] %v1714_v62 }
  0x36   :  { %3549 = vst [vmem:[#allocation53_spill] sm:$0xff] %v1717_v63 }
  0x37   :  { %3550 = vst [vmem:[#allocation54_spill] sm:$0xff] %v1720_v8  ;;  %v1889_v8 = vadd.f32 %v168_v34, %v1777_v6 }
  0x38   :  { %3551 = vst [vmem:[#allocation55_spill] sm:$0xff] %v1723_v12  ;;  %v1881_v12 = vld [vmem:[#allocation6 + $0x70] sm:$0xff] }
  0x39   :  { %3552 = vst [vmem:[#allocation56_spill] sm:$0xff] %v1726_v13 }
  0x3a   :  { %3553 = vst [vmem:[#allocation57_spill] sm:$0xff] %v1729_v14  ;;  %v191_v14 = vmul.f32 0.5, %v1829_v54 }
  0x3b   :  { %3554 = vst [vmem:[#allocation58_spill] sm:$0xff] %v1731_v17 }
  0x3c   :  { %3555 = vst [vmem:[#allocation59_spill] sm:$0xff] %v1733_v18 }
  0x3d   :  { %3556 = vst [vmem:[#allocation60_spill] sm:$0xff] %v1735_v19  ;;  %v1799_v19 = vadd.f32 %v146_v50, %v1691_v53  ;;  %v1821_v50 = vld [vmem:[#allocation6 + $0x40] sm:$0xff]  ;;  %v1832_v53 = vsub.f32 %v1753_v4, %v167_v9 }
  0x3e   :  { %3557 = vst [vmem:[#allocation61_spill] sm:$0xff] %v1737_v20  ;;  %v1791_v20 = vld [vmem:[#allocation6 + $0x30] sm:$0xff] }
  0x3f   :  { %3558 = vst [vmem:[#allocation62_spill] sm:$0xff] %v1739_v23  ;;  %v171_v23 = vmul.f32 0.5, %v1769_v41 }
  0x40   :  { %3559 = vst [vmem:[#allocation63_spill] sm:$0xff] %v1742_v22  ;;  %v1861_v22 = vld [vmem:[#allocation6 + $0xf8] sm:$0xff] }
  0x41   :  { %3560 = vst [vmem:[#allocation64_spill] sm:$0xff] %v1745_v21  ;;  %v190_v21 = vmul.f32 0.5, %v1827_v59 }
  0x42   :  { %3561 = vst [vmem:[#allocation65_spill] sm:$0xff] %v1748_v16  ;;  %v189_v16 = vmul.f32 0.5, %v1825_v58 }
  0x43   :  { %3562 = vst [vmem:[#allocation66_spill] sm:$0xff] %v1751_v15 }
  0x44   :  { %3563 = vst [vmem:[#allocation67_spill] sm:$0xff] %v1753_v4 }
  0x45   :  { %3564 = vst [vmem:[#allocation68_spill] sm:$0xff] %v1755_v3  ;;  %v172_v3 = vmul.f32 0.5, %v1771_v30 }
  0x46   :  { %3565 = vst [vmem:[#allocation69_spill] sm:$0xff] %v1757_v2  ;;  %v1793_v2 = vld [vmem:[#allocation6 + $0x38] sm:$0xff] }
  0x47   :  { %3566 = vst [vmem:[#allocation70_spill] sm:$0xff] %v1759_v47  ;;  %v1796_v47 = vadd.f32 %v145_v49, %v1689_v52  ;;  %v1819_v49 = vmul.f32 %v1633_v25, %v1593_v1  ;;  %v1841_v1 = vsub.f32 %v1781_v31, %v170_v33  ;;  %v1843_v25 = vld [vmem:[#allocation6 + $0x50] sm:$0xff]  ;;  %v1845_v52 = vld [vmem:[#allocation6 + $0xd8] sm:$0xff] }
  0x48   :  { %3567 = vst [vmem:[#allocation71_spill] sm:$0xff] %v1762_v11  ;;  %v1855_v11 = vsub.f32 %v1793_v2, %v172_v3  ;;  %v192_v13 = vmul.f32 0.5, %v1845_v52 }
  0x49   :  { %3568 = vst [vmem:[#allocation72_spill] sm:$0xff] %v1765_v40 }
  0x4a   :  { %3569 = vst [vmem:[#allocation73_spill] sm:$0xff] %v1769_v41  ;;  %v1849_v41 = vld [vmem:[#allocation6 + $0xe8] sm:$0xff] }
  0x4b   :  { %3570 = vst [vmem:[#allocation74_spill] sm:$0xff] %v1771_v30  ;;  %v1815_v30 = vmul.f32 %v1631_v24, %v1591_v0  ;;  %v1835_v0 = vsub.f32 %v1777_v6, %v168_v34  ;;  %v1838_v24 = vsub.f32 %v1779_v42, %v169_v7  ;;  %v1910_v34 = vsub.f32 %v1843_v25, %v191_v14 }
  0x4c   :  { %3571 = vst [vmem:[#allocation75_spill] sm:$0xff] %v1777_v6 }
  0x4d   :  { %3572 = vst [vmem:[#allocation76_spill] sm:$0xff] %v1779_v42 }
  0x4e   :  { %3573 = vst [vmem:[#allocation77_spill] sm:$0xff] %v1781_v31 }
  0x4f   :  { %3574 = vst [vmem:[#allocation78_spill] sm:$0xff] %v1784_v32  ;;  %v1871_v32 = vld [vmem:[#allocation6 + $0x68] sm:$0xff] }
  0x50   :  { %3575 = vst [vmem:[#allocation79_spill] sm:$0xff] %v1787_v5  ;;  %v1869_v5 = vld [vmem:[#allocation6 + $0x60] sm:$0xff] }
  0x51   :  { %3576 = vst [vmem:[#allocation80_spill] sm:$0xff] %v1791_v20 }
  0x52   :  { %3577 = vst [vmem:[#allocation81_spill] sm:$0xff] %v1793_v2 }
  0x53   :  { %3578 = vst [vmem:[#allocation82_spill] sm:$0xff] %v1796_v47  ;;  %v1867_v47 = vld [vmem:[#allocation6 + $0x58] sm:$0xff] }
  0x54   :  { %3579 = vst [vmem:[#allocation83_spill] sm:$0xff] %v1799_v19  ;;  %v194_v19 = vmul.f32 0.5, %v1849_v41  ;;  %v1937_v6 = vadd.f32 %v192_v13, %v1867_v47 }
  0x55   :  { %3580 = vst [vmem:[#allocation84_spill] sm:$0xff] %v1802_v43 }
  0x56   :  { %3581 = vst [vmem:[#allocation85_spill] sm:$0xff] %v1805_v44  ;;  %v1859_v44 = vld [vmem:[#allocation6 + $0xf0] sm:$0xff] }
  0x57   :  { %3582 = vst [vmem:[#allocation86_spill] sm:$0xff] %v1815_v30  ;;  %v1852_v30 = vsub.f32 %v1791_v20, %v171_v23 }
  0x58   :  { %3583 = vst [vmem:[#allocation87_spill] sm:$0xff] %v1819_v49  ;;  %v1847_v49 = vld [vmem:[#allocation6 + $0xe0] sm:$0xff] }
  0x59   :  { %3584 = vst [vmem:[#allocation88_spill] sm:$0xff] %v1821_v50  ;;  %v193_v43 = vmul.f32 0.5, %v1847_v49 }
  0x5a   :  { %3585 = vst [vmem:[#allocation89_spill] sm:$0xff] %v1823_v51 }
  0x5b   :  { %3586 = vst [vmem:[#allocation90_spill] sm:$0xff] %v1825_v58  ;;  %v1877_v58 = vadd.f32 %v166_v39, %v1733_v18  ;;  %v1895_v39 = vadd.f32 %v170_v33, %v1781_v31  ;;  %v1898_v18 = vadd.f32 %v171_v23, %v1791_v20  ;;  %v1916_v33 = vsub.f32 %v1869_v5, %v193_v43 }
  0x5c   :  { %3587 = vst [vmem:[#allocation91_spill] sm:$0xff] %v1827_v59  ;;  %v1874_v59 = vadd.f32 %v165_v10, %v1731_v17  ;;  %v1892_v10 = vadd.f32 %v169_v7, %v1779_v42  ;;  %v1901_v17 = vadd.f32 %v172_v3, %v1793_v2  ;;  %v1913_v7 = vsub.f32 %v1867_v47, %v192_v13 }
  0x5d   :  { %3588 = vst [vmem:[#allocation92_spill] sm:$0xff] %v1829_v54  ;;  %v195_v54 = vmul.f32 0.5, %v1859_v44  ;;  %v1919_v23 = vsub.f32 %v1871_v32, %v194_v19  ;;  %v1928_v20 = vadd.f32 %v189_v16, %v1821_v50  ;;  %v1931_v31 = vadd.f32 %v190_v21, %v1823_v51 }
  0x5e   :  { %3589 = vst [vmem:[#allocation93_spill] sm:$0xff] %v1832_v53  ;;  %v1934_v42 = vadd.f32 %v191_v14, %v1843_v25  ;;  %v222_v14 = vmax.f32 %v1639_v27, %v1811_v45 }
  0x5f   :  { %3590 = vst [vmem:[#allocation94_spill] sm:$0xff] %v1835_v0  ;;  %v1922_v3 = vsub.f32 %v1881_v12, %v195_v54  ;;  %v1954_v13 = vadd.f32 %v195_v54, %v1881_v12  ;;  %v220_v54 = vmin.f32 %v1717_v63, %v1901_v17 }
  0x60   :  { %3591 = vst [vmem:[#allocation95_spill] sm:$0xff] %v1838_v24 }
  0x61   :  { %3592 = vst [vmem:[#allocation96_spill] sm:$0xff] %v1841_v1 }
  0x62   :  { %3593 = vst [vmem:[#allocation97_spill] sm:$0xff] %v1843_v25  ;;  %v219_v25 = vmin.f32 %v1714_v62, %v1898_v18  ;;  %v228_v62 = vmax.f32 %v1667_v38, %v1855_v11 }
  0x63   :  { %3594 = vst [vmem:[#allocation98_spill] sm:$0xff] %v1845_v52  ;;  %v196_v52 = vmul.f32 0.5, %v1861_v22 }
  0x64   :  { %3595 = vst [vmem:[#allocation99_spill] sm:$0xff] %v1847_v49  ;;  %v1883_v49 = vld [vmem:[#allocation6 + $0x78] sm:$0xff] }
  0x65   :  { %3596 = vst [vmem:[#allocation100_spill] sm:$0xff] %v1849_v41  ;;  %v1886_v41 = vadd.f32 %v167_v9, %v1753_v4  ;;  %v1907_v9 = vsub.f32 %v1823_v51, %v190_v21  ;;  %v1925_v2 = vsub.f32 %v1883_v49, %v196_v52  ;;  %v1940_v4 = vadd.f32 %v193_v43, %v1869_v5 }
  0x66   :  { %3597 = vst [vmem:[#allocation101_spill] sm:$0xff] %v1852_v30  ;;  %v221_v21 = vmax.f32 %v1636_v26, %v1808_v46  ;;  %v1957_v43 = vadd.f32 %v196_v52, %v1883_v49  ;;  %v223_v52 = vmax.f32 %v1642_v28, %v1832_v53  ;;  %v226_v51 = vmax.f32 %v1661_v36, %v1841_v1  ;;  %v3627_v1 = vld [vmem:[#allocation78_spill] sm:$0xff] }
  0x67   :  { %3598 = vst [vmem:[#allocation102_spill] sm:$0xff] %v1855_v11  ;;  %v245_v28 = vmin.f32 %v1751_v15, %v1928_v20 }
  0x68   :  { %3599 = vst [vmem:[#allocation103_spill] sm:$0xff] %v1859_v44  ;;  %v1943_v44 = vadd.f32 %v194_v19, %v1871_v32  ;;  %v215_v19 = vmin.f32 %v1699_v56, %v1886_v41 }
  0x69   :  { %3600 = vst [vmem:[#allocation104_spill] sm:$0xff] %v1861_v22  ;;  %v1904_v22 = vsub.f32 %v1821_v50, %v189_v16  ;;  %v214_v16 = vmin.f32 %v1696_v55, %v1877_v58  ;;  %v227_v50 = vmax.f32 %v1664_v37, %v1852_v30  ;;  %v247_v37 = vmin.f32 %v3627_v1, %v1934_v42  ;;  %v3628_v30 = vld [vmem:[#allocation79_spill] sm:$0xff] }
  0x6a   :  { %3601 = vst [vmem:[#allocation105_spill] sm:$0xff] %v1867_v47  ;;  %v218_v47 = vmin.f32 %v1711_v61, %v1895_v39  ;;  %v248_v38 = vmin.f32 %v3628_v30, %v1937_v6  ;;  %v3634_v1 = vld [vmem:[#allocation63_spill] sm:$0xff]  ;;  %v3635_v30 = vld [vmem:[#allocation85_spill] sm:$0xff] }
  0x6b   :  { %3602 = vst [vmem:[#allocation106_spill] sm:$0xff] %v1869_v5  ;;  %v217_v5 = vmin.f32 %v1708_v60, %v1892_v10  ;;  %v230_v63 = vsub.f32 %v214_v16, %v222_v14  ;;  %v235_v53 = vsub.f32 %v219_v25, %v227_v50  ;;  %v3651_v50 = vld [vmem:[#allocation36_spill] sm:$0xff] }
  0x6c   :  { %3603 = vst [vmem:[#allocation107_spill] sm:$0xff] %v1871_v32  ;;  %v216_v32 = vmin.f32 %v1702_v57, %v1889_v8 }
  0x6d   :  { %3604 = vst [vmem:[#allocation108_spill] sm:$0xff] %v1881_v12  ;;  %v225_v12 = vmax.f32 %v1658_v35, %v1838_v24  ;;  %v3626_v24 = vld [vmem:[#allocation55_spill] sm:$0xff]  ;;  %v238_v61 = vmax.f32 %v230_v63, 0.0 }
  0x6e   :  { %3605 = vst [vmem:[#allocation109_spill] sm:$0xff] %v1883_v49  ;;  %v224_v49 = vmax.f32 %v1645_v29, %v1835_v0  ;;  %v246_v29 = vmin.f32 %v1765_v40, %v1931_v31  ;;  %v3625_v0 = vld [vmem:[#allocation54_spill] sm:$0xff]  ;;  %v254_v36 = vmax.f32 %v3626_v24, %v1907_v9  ;;  %v3631_v40 = vld [vmem:[#allocation84_spill] sm:$0xff]  ;;  %v3633_v24 = vld [vmem:[#allocation57_spill] sm:$0xff] }
  0x6f   :  { %3606 = vst [vmem:[#allocation110_spill] sm:$0xff] %v1895_v39  ;;  %v253_v35 = vmax.f32 %v3625_v0, %v1904_v22  ;;  %v3632_v0 = vld [vmem:[#allocation56_spill] sm:$0xff] }
  0x70   :  { %3607 = vst [vmem:[#allocation111_spill] sm:$0xff] %v1898_v18  ;;  %v262_v11 = vsub.f32 %v246_v29, %v254_v36  ;;  %v3640_v36 = vld [vmem:[#allocation60_spill] sm:$0xff] }
  0x71   :  { %3608 = vst [vmem:[#allocation112_spill] sm:$0xff] %v1901_v17 }
  0x72   :  { %3609 = vst [vmem:[#allocation113_spill] sm:$0xff] %v1904_v22  ;;  %v255_v22 = vmax.f32 %v3632_v0, %v1910_v34  ;;  %v232_v0 = vsub.f32 %v216_v32, %v224_v49  ;;  %v3650_v49 = vld [vmem:[#allocation19_spill] sm:$0xff] }
  0x73   :  { %3610 = vst [vmem:[#allocation114_spill] sm:$0xff] %v1907_v9  ;;  %v256_v9 = vmax.f32 %v3633_v24, %v1913_v7  ;;  %v233_v24 = vsub.f32 %v217_v5, %v225_v12 }
  0x74   :  { %3611 = vst [vmem:[#allocation115_spill] sm:$0xff] %v1910_v34  ;;  %v261_v34 = vsub.f32 %v245_v28, %v253_v35  ;;  %v263_v17 = vsub.f32 %v247_v37, %v255_v22  ;;  %v243_v28 = vmax.f32 %v235_v53, 0.0 }
  0x75   :  { %3612 = vst [vmem:[#allocation116_spill] sm:$0xff] %v1913_v7  ;;  %v234_v7 = vsub.f32 %v218_v47, %v226_v51  ;;  %v3641_v47 = vld [vmem:[#allocation90_spill] sm:$0xff]  ;;  %v289_v51 = vmul.f32 %v3651_v50, %v3650_v49  ;;  %v3665_v49 = vld [vmem:[#allocation73_spill] sm:$0xff]  ;;  %v3666_v50 = vld [vmem:[#allocation103_spill] sm:$0xff] }
  0x76   :  { %3613 = vst [vmem:[#allocation117_spill] sm:$0xff] %v1916_v33  ;;  %v269_v60 = vmax.f32 %v261_v34, 0.0  ;;  %v271_v5 = vmax.f32 %v263_v17, 0.0  ;;  %v293_v22 = vmul.f32 %v3641_v47, %v3640_v36  ;;  %v3647_v17 = vld [vmem:[#allocation92_spill] sm:$0xff] }
  0x77   :  { %3614 = vst [vmem:[#allocation118_spill] sm:$0xff] %v1919_v23  ;;  %v242_v32 = vmax.f32 %v234_v7, 0.0 }
  0x78   :  { %3615 = vst [vmem:[#allocation119_spill] sm:$0xff] %v1922_v3 }
  0x79   :  { %3616 = vst [vmem:[#allocation120_spill] sm:$0xff] %v1925_v2  ;;  %v213_v2 = vmin.f32 %v1684_v48, %v1874_v59 }
  0x7a   :  { %3617 = vst [vmem:[#allocation121_spill] sm:$0xff] %v1928_v20  ;;  %v231_v20 = vsub.f32 %v215_v19, %v223_v52  ;;  %v241_v19 = vmax.f32 %v233_v24, 0.0  ;;  %v3645_v24 = vld [vmem:[#allocation34_spill] sm:$0xff] }
  0x7b   :  { %3618 = vst [vmem:[#allocation122_spill] sm:$0xff] %v1931_v31  ;;  %v229_v18 = vsub.f32 %v213_v2, %v221_v21  ;;  %v3629_v2 = vld [vmem:[#allocation82_spill] sm:$0xff]  ;;  %v3630_v21 = vld [vmem:[#allocation83_spill] sm:$0xff]  ;;  %v251_v31 = vmin.f32 %v3631_v40, %v1954_v13 }
  0x7c   :  { %3619 = vst [vmem:[#allocation123_spill] sm:$0xff] %v1934_v42  ;;  %v249_v16 = vmin.f32 %v3629_v2, %v1940_v4  ;;  %v250_v14 = vmin.f32 %v3630_v21, %v1943_v44  ;;  %v257_v42 = vmax.f32 %v3634_v1, %v1916_v33  ;;  %v3636_v2 = vld [vmem:[#allocation64_spill] sm:$0xff]  ;;  %v3637_v21 = vld [vmem:[#allocation65_spill] sm:$0xff]  ;;  %v3639_v40 = vld [vmem:[#allocation71_spill] sm:$0xff]  ;;  %v236_v1 = vsub.f32 %v220_v54, %v228_v62 }
  0x7d   :  { %3620 = vst [vmem:[#allocation124_spill] sm:$0xff] %v1937_v6  ;;  %v252_v6 = vmin.f32 %v3635_v30, %v1957_v43  ;;  %v237_v33 = vmax.f32 %v229_v18, 0.0  ;;  %v264_v30 = vsub.f32 %v248_v38, %v256_v9  ;;  %v3646_v18 = vld [vmem:[#allocation62_spill] sm:$0xff]  ;;  %v3654_v9 = vld [vmem:[#allocation68_spill] sm:$0xff] }
  0x7e   :  { %3621 = vst [vmem:[#allocation125_spill] sm:$0xff] %v1940_v4  ;;  %v258_v4 = vmax.f32 %v3636_v2, %v1919_v23  ;;  %v244_v29 = vmax.f32 %v236_v1, 0.0  ;;  %v3653_v1 = vld [vmem:[#allocation41_spill] sm:$0xff]  ;;  %v3661_v54 = vld [vmem:[#allocation100_spill] sm:$0xff] }
  0x7f   :  { %3622 = vst [vmem:[#allocation126_spill] sm:$0xff] %v1943_v44  ;;  %v259_v44 = vmax.f32 %v3637_v21, %v1922_v3  ;;  %v239_v21 = vmax.f32 %v231_v20, 0.0  ;;  %v240_v3 = vmax.f32 %v232_v0, 0.0  ;;  %v272_v35 = vmax.f32 %v264_v30, 0.0  ;;  %v3648_v20 = vld [vmem:[#allocation18_spill] sm:$0xff]  ;;  %v3652_v0 = vld [vmem:[#allocation20_spill] sm:$0xff] }
  0x80   :  { %3623 = vst [vmem:[#allocation127_spill] sm:$0xff] %v1954_v13  ;;  %v3638_v15 = vld [vmem:[#allocation120_spill] sm:$0xff]  ;;  %v266_v2 = vsub.f32 %v250_v14, %v258_v4  ;;  %v3642_v4 = vld [vmem:[#allocation61_spill] sm:$0xff]  ;;  %v2019_v63 = vmul.f32 %v269_v60, %v237_v33  ;;  %v295_v30 = vmul.f32 %v3647_v17, %v3646_v18  ;;  %v3655_v60 = vld [vmem:[#allocation98_spill] sm:$0xff] }
  0x81   :  { %3624 = vst [vmem:[#allocation128_spill] sm:$0xff] %v1957_v43  ;;  %v260_v13 = vmax.f32 %v3639_v40, %v3638_v15  ;;  %v265_v43 = vsub.f32 %v249_v16, %v257_v42  ;;  %v267_v23 = vsub.f32 %v251_v31, %v259_v44  ;;  %v270_v40 = vmax.f32 %v262_v11, 0.0  ;;  %v3643_v31 = vld [vmem:[#allocation91_spill] sm:$0xff]  ;;  %v3644_v11 = vld [vmem:[#allocation17_spill] sm:$0xff]  ;;  %v3663_v14 = vld [vmem:[#allocation22_spill] sm:$0xff] }
  0x82   :  { %v274_v37 = vmax.f32 %v266_v2, 0.0  ;;  %v287_v53 = vmul.f32 %v3645_v24, %v3644_v11  ;;  %v3649_v42 = vld [vmem:[#allocation35_spill] sm:$0xff]  ;;  %v296_v34 = vmul.f32 %v3655_v60, %v3654_v9  ;;  %v3658_v33 = vld [vmem:[#allocation69_spill] sm:$0xff]  ;;  %v3662_v2 = vld [vmem:[#allocation86_spill] sm:$0xff] }
  0x83   :  { %v268_v39 = vsub.f32 %v252_v6, %v260_v13  ;;  %v273_v25 = vmax.f32 %v265_v43, 0.0  ;;  %v275_v38 = vmax.f32 %v267_v23, 0.0  ;;  %v294_v6 = vmul.f32 %v3643_v31, %v3642_v4  ;;  %v3659_v23 = vld [vmem:[#allocation99_spill] sm:$0xff]  ;;  %v3660_v43 = vld [vmem:[#allocation70_spill] sm:$0xff]  ;;  %v3664_v11 = vld [vmem:[#allocation45_spill] sm:$0xff] }
  0x84   :  { %v2021_v12 = vmul.f32 %v270_v40, %v238_v61  ;;  %v288_v44 = vmul.f32 %v3649_v42, %v3648_v20  ;;  %v3656_v40 = vld [vmem:[#allocation21_spill] sm:$0xff]  ;;  %v3657_v61 = vld [vmem:[#allocation42_spill] sm:$0xff]  ;;  %v297_v13 = vmul.f32 %v3659_v23, %v3658_v33  ;;  %v298_v52 = vmul.f32 %v3661_v54, %v3660_v43  ;;  %v3668_v42 = vld [vmem:[#allocation104_spill] sm:$0xff] }
  0x85   :  { %v276_v62 = vmax.f32 %v268_v39, 0.0  ;;  %v290_v39 = vmul.f32 %v3653_v1, %v3652_v0  ;;  %v291_v7 = vmul.f32 %v3657_v61, %v3656_v40  ;;  %v301_v16 = vadd.f32 %v293_v22, %v3662_v2  ;;  %v3667_v1 = vld [vmem:[#allocation74_spill] sm:$0xff]  ;;  %v3669_v18 = vld [vmem:[#allocation87_spill] sm:$0xff] }
  0x86   :  { %v292_v20 = vmul.f32 %v3664_v11, %v3663_v14  ;;  %v299_v0 = vmul.f32 %v3666_v50, %v3665_v49  ;;  %v300_v9 = vmul.f32 %v3668_v42, %v3667_v1  ;;  %v302_v4 = vadd.f32 %v294_v6, %v3669_v18  ;;  %v3718_v42 = vld [vmem:[#allocation65_spill] sm:$0xff] }
  0x87   :  { %v2049_v40 = vmul.f32 %v271_v5, %v239_v21  ;;  %v303_v61 = vadd.f32 %v295_v30, %v287_v53  ;;  %v2051_v33 = vmul.f32 %v272_v35, %v240_v3  ;;  %v2053_v24 = vmul.f32 %v273_v25, %v241_v19 }
  0x88   :  { %v2055_v43 = vmul.f32 %v274_v37, %v242_v32  ;;  %v304_v22 = vadd.f32 %v296_v34, %v288_v44  ;;  %v2057_v2 = vmul.f32 %v275_v38, %v243_v28  ;;  %v305_v14 = vadd.f32 %v297_v13, %v289_v51  ;;  %v3676_v13 = vld [vmem:[#allocation53_spill] sm:$0xff] }
  0x89   :  { %v306_v11 = vadd.f32 %v298_v52, %v290_v39  ;;  %v309_v49 = vsub.f32 %v301_v16, %v2019_v63  ;;  %v2060_v36 = vmul.f32 %v276_v62, %v244_v29  ;;  %v307_v1 = vadd.f32 %v299_v0, %v291_v7  ;;  %v3674_v7 = vld [vmem:[#allocation52_spill] sm:$0xff]  ;;  %v3678_v52 = vld [vmem:[#allocation30_spill] sm:$0xff]  ;;  %v3680_v16 = vld [vmem:[#allocation31_spill] sm:$0xff] }
  0x8a   :  { %v308_v6 = vadd.f32 %v300_v9, %v292_v20  ;;  %v310_v21 = vsub.f32 %v302_v4, %v2021_v12  ;;  %v311_v3 = vsub.f32 %v303_v61, %v2049_v40  ;;  %v312_v19 = vsub.f32 %v304_v22, %v2051_v33  ;;  %v3672_v9 = vld [vmem:[#allocation51_spill] sm:$0xff]  ;;  %v3683_v20 = vld [vmem:[#allocation96_spill] sm:$0xff]  ;;  %v3685_v22 = vld [vmem:[#allocation101_spill] sm:$0xff] }
  0x8b   :  { %v313_v32 = vsub.f32 %v305_v14, %v2053_v24  ;;  %v314_v5 = vsub.f32 %v306_v11, %v2055_v43  ;;  %v317_v28 = vadd.f32 1e-07, %v309_v49  ;;  %v315_v35 = vsub.f32 %v307_v1, %v2057_v2  ;;  %v3673_v61 = vld [vmem:[#allocation111_spill] sm:$0xff]  ;;  %v3682_v11 = vld [vmem:[#allocation37_spill] sm:$0xff]  ;;  %v3684_v49 = vld [vmem:[#allocation38_spill] sm:$0xff] }
  0x8c   :  { %v316_v25 = vsub.f32 %v308_v6, %v2060_v36  ;;  %v318_v37 = vadd.f32 1e-07, %v310_v21  ;;  %v319_v29 = vadd.f32 1e-07, %v311_v3  ;;  %v320_v38 = vadd.f32 1e-07, %v312_v19 }
  0x8d   :  { %v341_v62 = vmax.f32 %v1684_v48, %v1874_v59  ;;  %v321_v4 = vadd.f32 1e-07, %v313_v32  ;;  %v322_v53 = vadd.f32 1e-07, %v314_v5  ;;  %1306 = vrcp.f32 %v317_v28  ;;  %v3670_v59 = vld [vmem:[#allocation50_spill] sm:$0xff]  ;;  %v3686_v14 = vld [vmem:[#allocation39_spill] sm:$0xff] }
  0x8e   :  { %v342_v18 = vmax.f32 %v1696_v55, %v1877_v58  ;;  %v323_v30 = vadd.f32 1e-07, %v315_v35  ;;  %v324_v44 = vadd.f32 1e-07, %v316_v25  ;;  %1308 = vrcp.f32 %v318_v37  ;;  %v3671_v58 = vld [vmem:[#allocation110_spill] sm:$0xff]  ;;  %v3688_v19 = vld [vmem:[#allocation40_spill] sm:$0xff] }
  0x8f   :  { %v343_v51 = vmax.f32 %v1699_v56, %v1886_v41  ;;  %1310 = vrcp.f32 %v319_v29  ;;  %v344_v1 = vmax.f32 %v1702_v57, %v1889_v8  ;;  %v349_v39 = vmin.f32 %v1636_v26, %v1808_v46  ;;  %v3675_v41 = vld [vmem:[#allocation112_spill] sm:$0xff]  ;;  %v3677_v8 = vld [vmem:[#allocation93_spill] sm:$0xff]  ;;  %v3679_v46 = vld [vmem:[#allocation94_spill] sm:$0xff] }
  0x90   :  { %v350_v48 = vmin.f32 %v1639_v27, %v1811_v45  ;;  %1312 = vrcp.f32 %v320_v38  ;;  %v345_v55 = vmax.f32 %v3670_v59, %v1892_v10  ;;  %v346_v34 = vmax.f32 %v3672_v9, %v3671_v58  ;;  %v3681_v45 = vld [vmem:[#allocation95_spill] sm:$0xff]  ;;  %v3687_v3 = vld [vmem:[#allocation102_spill] sm:$0xff]  ;;  %v3689_v25 = vld [vmem:[#allocation121_spill] sm:$0xff] }
  0x91   :  { %v347_v56 = vmax.f32 %v3674_v7, %v3673_v61  ;;  %1314 = vrcp.f32 %v321_v4  ;;  %v348_v57 = vmax.f32 %v3676_v13, %v3675_v41  ;;  %v351_v26 = vmin.f32 %v3678_v52, %v3677_v8  ;;  %v3690_v37 = vld [vmem:[#allocation66_spill] sm:$0xff]  ;;  %v3692_v4 = vld [vmem:[#allocation72_spill] sm:$0xff]  ;;  %v3693_v59 = vld [vmem:[#allocation113_spill] sm:$0xff] }
  0x92   :  { %v352_v27 = vmin.f32 %v3680_v16, %v3679_v46  ;;  %1316 = vrcp.f32 %v322_v53  ;;  %v353_v10 = vmin.f32 %v3682_v11, %v3681_v45  ;;  %v354_v0 = vmin.f32 %v3684_v49, %v3683_v20  ;;  %v3691_v38 = vld [vmem:[#allocation122_spill] sm:$0xff]  ;;  %v3696_v7 = vld [vmem:[#allocation55_spill] sm:$0xff]  ;;  %v3702_v46 = vld [vmem:[#allocation56_spill] sm:$0xff] }
  0x93   :  { %v355_v6 = vmin.f32 %v3686_v14, %v3685_v22  ;;  %v1307_v21 = vpop.eup %1306  ;;  %1318 = vrcp.f32 %v323_v30  ;;  %v356_v32 = vmin.f32 %v3688_v19, %v3687_v3  ;;  %v357_v5 = vsub.f32 %v341_v62, %v349_v39  ;;  %v3694_v58 = vld [vmem:[#allocation54_spill] sm:$0xff]  ;;  %v3697_v13 = vld [vmem:[#allocation123_spill] sm:$0xff]  ;;  %v3703_v45 = vld [vmem:[#allocation116_spill] sm:$0xff] }
  0x94   :  { %v358_v28 = vsub.f32 %v342_v18, %v350_v48  ;;  %v2101_v35 = vpop.eup %1308  ;;  %v373_v29 = vmax.f32 %v3690_v37, %v3689_v25  ;;  %v374_v53 = vmax.f32 %v3692_v4, %v3691_v38  ;;  %v381_v9 = vmin.f32 %v3694_v58, %v3693_v59  ;;  %v3695_v61 = vld [vmem:[#allocation114_spill] sm:$0xff]  ;;  %v3699_v18 = vld [vmem:[#allocation124_spill] sm:$0xff]  ;;  %v3700_v39 = vld [vmem:[#allocation79_spill] sm:$0xff] }
  0x95   :  { %v382_v41 = vmin.f32 %v3696_v7, %v3695_v61  ;;  %v2111_v30 = vpop.eup %1310  ;;  %v3698_v8 = vld [vmem:[#allocation78_spill] sm:$0xff]  ;;  %v376_v48 = vmax.f32 %v3700_v39, %v3699_v18  ;;  %v3701_v52 = vld [vmem:[#allocation115_spill] sm:$0xff]  ;;  %v3704_v11 = vld [vmem:[#allocation57_spill] sm:$0xff]  ;;  %v360_v54 = vsub.f32 %v344_v1, %v352_v27  ;;  %1320 = vrcp.f32 %v324_v44 }
  0x96   :  { %v375_v62 = vmax.f32 %v3698_v8, %v3697_v13  ;;  %v383_v16 = vmin.f32 %v3702_v46, %v3701_v52  ;;  %v384_v20 = vmin.f32 %v3704_v11, %v3703_v45  ;;  %v2121_v49 = vpop.eup %1312  ;;  %v3705_v22 = vld [vmem:[#allocation125_spill] sm:$0xff]  ;;  %v3706_v14 = vld [vmem:[#allocation82_spill] sm:$0xff]  ;;  %v3708_v25 = vld [vmem:[#allocation83_spill] sm:$0xff] }
  0x97   :  { %v377_v3 = vmax.f32 %v3706_v14, %v3705_v22  ;;  %v3707_v19 = vld [vmem:[#allocation126_spill] sm:$0xff]  ;;  %v3709_v38 = vld [vmem:[#allocation117_spill] sm:$0xff]  ;;  %v3710_v4 = vld [vmem:[#allocation63_spill] sm:$0xff]  ;;  %v1315_v13 = vpop.eup %1314 }
  0x98   :  { %v378_v37 = vmax.f32 %v3708_v25, %v3707_v19  ;;  %v385_v59 = vmin.f32 %v3710_v4, %v3709_v38  ;;  %v3711_v58 = vld [vmem:[#allocation118_spill] sm:$0xff]  ;;  %v3712_v61 = vld [vmem:[#allocation64_spill] sm:$0xff]  ;;  %v3713_v8 = vld [vmem:[#allocation127_spill] sm:$0xff]  ;;  %v1317_v19 = vpop.eup %1316  ;;  %v359_v25 = vsub.f32 %v343_v51, %v351_v26  ;;  %v389_v38 = vsub.f32 %v373_v29, %v381_v9 }
  0x99   :  { %v386_v7 = vmin.f32 %v3712_v61, %v3711_v58  ;;  %v3714_v18 = vld [vmem:[#allocation84_spill] sm:$0xff]  ;;  %v3716_v46 = vld [vmem:[#allocation85_spill] sm:$0xff]  ;;  %v3717_v11 = vld [vmem:[#allocation119_spill] sm:$0xff]  ;;  %v390_v4 = vsub.f32 %v374_v53, %v382_v41  ;;  %v1319_v23 = vpop.eup %1318  ;;  %v361_v58 = vsub.f32 %v345_v55, %v353_v10  ;;  %v391_v61 = vsub.f32 %v375_v62, %v383_v16 }
  0x9a   :  { %v379_v39 = vmax.f32 %v3714_v18, %v3713_v8  ;;  %v3715_v52 = vld [vmem:[#allocation128_spill] sm:$0xff]  ;;  %v387_v50 = vmin.f32 %v3718_v42, %v3717_v11  ;;  %v3719_v22 = vld [vmem:[#allocation71_spill] sm:$0xff]  ;;  %v392_v60 = vsub.f32 %v376_v48, %v384_v20  ;;  %v2140_v8 = vmul.f32 %v1307_v21, %v2019_v63 }
  0x9b   :  { %v380_v45 = vmax.f32 %v3716_v46, %v3715_v52  ;;  %v388_v14 = vmin.f32 %v3719_v22, %v3638_v15  ;;  %v362_v18 = vsub.f32 %v346_v34, %v354_v0  ;;  %v393_v52 = vsub.f32 %v377_v3, %v385_v59  ;;  %v1321_v21 = vpop.eup %1320 }
  0x9c   :  { %3720 = vst [vmem:[#allocation120_spill] sm:$0xff] %v2140_v8  ;;  %v394_v46 = vsub.f32 %v378_v37, %v386_v7  ;;  %v363_v42 = vsub.f32 %v347_v56, %v355_v6  ;;  %v364_v11 = vsub.f32 %v348_v57, %v356_v32  ;;  %v395_v17 = vsub.f32 %v379_v39, %v387_v50 }
  0x9d   :  { %v396_v15 = vsub.f32 %v380_v45, %v388_v14  ;;  %v365_v22 = vmax.f32 %v357_v5, 0.0  ;;  %v366_v51 = vmax.f32 %v358_v28, 0.0  ;;  %v397_v1 = vmax.f32 %v389_v38, 0.0 }
  0x9e   :  { %v398_v26 = vmax.f32 %v390_v4, 0.0  ;;  %v367_v27 = vmax.f32 %v359_v25, 0.0  ;;  %v368_v29 = vmax.f32 %v360_v54, 0.0  ;;  %v399_v44 = vmax.f32 %v391_v61, 0.0 }
  0x9f   :  { %v400_v55 = vmax.f32 %v392_v60, 0.0  ;;  %v369_v10 = vmax.f32 %v361_v58, 0.0  ;;  %v370_v53 = vmax.f32 %v362_v18, 0.0  ;;  %v401_v9 = vmax.f32 %v393_v52, 0.0 }
  0xa0   :  { %v402_v63 = vmax.f32 %v394_v46, 0.0  ;;  %v371_v34 = vmax.f32 %v363_v42, 0.0  ;;  %v372_v0 = vmax.f32 %v364_v11, 0.0  ;;  %v403_v41 = vmax.f32 %v395_v17, 0.0  ;;  %v3736_v46 = vld [vmem:[#allocation58_spill] sm:$0xff] }
  0xa1   :  { %v404_v56 = vmax.f32 %v396_v15, 0.0  ;;  %v405_v57 = vmul.f32 %v365_v22, %v365_v22  ;;  %v406_v50 = vmul.f32 %v366_v51, %v366_v51  ;;  %v413_v6 = vmul.f32 %v397_v1, %v397_v1  ;;  %v3737_v11 = vld [vmem:[#allocation98_spill] sm:$0xff]  ;;  %v3740_v22 = vld [vmem:[#allocation99_spill] sm:$0xff] }
  0xa2   :  { %v414_v32 = vmul.f32 %v398_v26, %v398_v26  ;;  %v407_v5 = vmul.f32 %v367_v27, %v367_v27  ;;  %v408_v28 = vmul.f32 %v368_v29, %v368_v29  ;;  %v415_v62 = vmul.f32 %v399_v44, %v399_v44  ;;  %v3741_v1 = vld [vmem:[#allocation15_spill] sm:$0xff]  ;;  %v3743_v29 = vld [vmem:[#allocation16_spill] sm:$0xff] }
  0xa3   :  { %v416_v48 = vmul.f32 %v400_v55, %v400_v55  ;;  %v409_v54 = vmul.f32 %v369_v10, %v369_v10  ;;  %v410_v16 = vmul.f32 %v370_v53, %v370_v53  ;;  %v417_v60 = vmul.f32 %v401_v9, %v401_v9  ;;  %v3742_v26 = vld [vmem:[#allocation59_spill] sm:$0xff]  ;;  %v3745_v10 = vld [vmem:[#allocation100_spill] sm:$0xff] }
  0xa4   :  { %v418_v20 = vmul.f32 %v402_v63, %v402_v63  ;;  %v2144_v3 = vmul.f32 %v2101_v35, %v2021_v12  ;;  %v2148_v17 = vmul.f32 %v2111_v30, %v2049_v40  ;;  %v411_v37 = vmul.f32 %v371_v34, %v371_v34  ;;  %v3744_v44 = vld [vmem:[#allocation67_spill] sm:$0xff]  ;;  %v3748_v34 = vld [vmem:[#allocation24_spill] sm:$0xff] }
  0xa5   :  { %v419_v59 = vmul.f32 %v403_v41, %v403_v41  ;;  %v412_v7 = vmul.f32 %v372_v0, %v372_v0  ;;  %v420_v39 = vmul.f32 %v404_v56, %v404_v56  ;;  %v421_v45 = vadd.f32 %v413_v6, %v405_v57  ;;  %v3746_v9 = vld [vmem:[#allocation23_spill] sm:$0xff]  ;;  %v3749_v0 = vld [vmem:[#allocation76_spill] sm:$0xff]  ;;  %v3752_v6 = vld [vmem:[#allocation77_spill] sm:$0xff] }
  0xa6   :  { %3721 = vst [vmem:[#allocation90_spill] sm:$0xff] %v2144_v3  ;;  %v422_v14 = vadd.f32 %v414_v32, %v406_v50  ;;  %v2152_v25 = vmul.f32 %v2121_v49, %v2051_v33  ;;  %v2155_v38 = vmul.f32 %v1315_v13, %v2053_v24  ;;  %v423_v4 = vadd.f32 %v415_v62, %v407_v5  ;;  %v3747_v63 = vld [vmem:[#allocation75_spill] sm:$0xff]  ;;  %v3751_v50 = vld [vmem:[#allocation25_spill] sm:$0xff]  ;;  %v3753_v5 = vld [vmem:[#allocation26_spill] sm:$0xff] }
  0xa7   :  { %3722 = vst [vmem:[#allocation91_spill] sm:$0xff] %v2148_v17  ;;  %v424_v12 = vadd.f32 %v416_v48, %v408_v28  ;;  %v2158_v35 = vmul.f32 %v1317_v19, %v2055_v43  ;;  %v2161_v40 = vmul.f32 %v1319_v23, %v2057_v2  ;;  %v425_v30 = vadd.f32 %v417_v60, %v409_v54  ;;  %v3732_v19 = vld [vmem:[#allocation92_spill] sm:$0xff]  ;;  %v3750_v56 = vld [vmem:[#allocation103_spill] sm:$0xff]  ;;  %v3756_v54 = vld [vmem:[#allocation81_spill] sm:$0xff] }
  0xa8   :  { %3723 = vst [vmem:[#allocation17_spill] sm:$0xff] %v2152_v25  ;;  %v426_v58 = vadd.f32 %v418_v20, %v410_v16  ;;  %v2164_v61 = vmul.f32 %v1321_v21, %v2060_v36  ;;  %v2166_v18 = vadd.f32 %v419_v59, %v411_v37  ;;  %v477_v33 = vadd.f32 1e-07, %v3641_v47  ;;  %v3735_v36 = vld [vmem:[#allocation14_spill] sm:$0xff]  ;;  %v3754_v28 = vld [vmem:[#allocation80_spill] sm:$0xff]  ;;  %v3755_v48 = vld [vmem:[#allocation27_spill] sm:$0xff] }
  0xa9   :  { %3724 = vst [vmem:[#allocation18_spill] sm:$0xff] %v2155_v38  ;;  %v478_v24 = vadd.f32 1e-07, %v3643_v31  ;;  %v2170_v49 = vadd.f32 %v420_v39, %v412_v7  ;;  %v2172_v13 = vadd.f32 1e-07, %v421_v45  ;;  %v437_v42 = vsub.f32 %v3736_v46, %v3735_v36  ;;  %v3757_v60 = vld [vmem:[#allocation32_spill] sm:$0xff] }
  0xaa   :  { %3725 = vst [vmem:[#allocation19_spill] sm:$0xff] %v2158_v35  ;;  %v2174_v43 = vadd.f32 1e-07, %v422_v14  ;;  %v479_v23 = vadd.f32 1e-07, %v3732_v19  ;;  %1322 = vrcp.f32 %v477_v33  ;;  %v438_v27 = vsub.f32 %v3742_v26, %v3741_v1  ;;  %v3758_v20 = vld [vmem:[#allocation88_spill] sm:$0xff] }
  0xab   :  { %3726 = vst [vmem:[#allocation20_spill] sm:$0xff] %v2161_v40  ;;  %v2177_v2 = vadd.f32 1e-07, %v423_v4  ;;  %v2179_v52 = vadd.f32 1e-07, %v424_v12  ;;  %v439_v55 = vsub.f32 %v3744_v44, %v3743_v29  ;;  %1324 = vrcp.f32 %v478_v24  ;;  %v3759_v59 = vld [vmem:[#allocation33_spill] sm:$0xff] }
  0xac   :  { %3727 = vst [vmem:[#allocation21_spill] sm:$0xff] %v2164_v61  ;;  %v480_v15 = vadd.f32 1e-07, %v3737_v11  ;;  %v2184_v47 = vadd.f32 1e-07, %v425_v30  ;;  %v440_v21 = vsub.f32 %v3747_v63, %v3746_v9  ;;  %v441_v41 = vsub.f32 %v3749_v0, %v3748_v34  ;;  %v3760_v7 = vld [vmem:[#allocation89_spill] sm:$0xff] }
  0xad   :  { %3728 = vst [vmem:[#allocation86_spill] sm:$0xff] %v2166_v18  ;;  %v2186_v31 = vadd.f32 1e-07, %v426_v58  ;;  %v481_v51 = vadd.f32 1e-07, %v3740_v22  ;;  %1326 = vrcp.f32 %v479_v23  ;;  %v442_v32 = vsub.f32 %v3752_v6, %v3751_v50  ;;  %v3761_v45 = vld [vmem:[#allocation104_spill] sm:$0xff] }
  0xae   :  { %3729 = vst [vmem:[#allocation22_spill] sm:$0xff] %v2170_v49  ;;  %v482_v53 = vadd.f32 1e-07, %v3745_v10  ;;  %v483_v57 = vadd.f32 1e-07, %v3750_v56  ;;  %v443_v62 = vsub.f32 %v3754_v28, %v3753_v5  ;;  %v444_v16 = vsub.f32 %v3756_v54, %v3755_v48  ;;  %v3762_v4 = vld [vmem:[#allocation43_spill] sm:$0xff] }
  0xaf   :  { %3730 = vst [vmem:[#allocation87_spill] sm:$0xff] %v2172_v13  ;;  %1328 = vrcp.f32 %v480_v15  ;;  %v445_v37 = vsub.f32 %v3758_v20, %v3757_v60  ;;  %v446_v39 = vsub.f32 %v3760_v7, %v3759_v59  ;;  %v484_v14 = vadd.f32 1e-07, %v3761_v45  ;;  %v3763_v12 = vld [vmem:[#allocation97_spill] sm:$0xff]  ;;  %v3765_v58 = vld [vmem:[#allocation44_spill] sm:$0xff]  ;;  %v3768_v19 = vld [vmem:[#allocation46_spill] sm:$0xff] }
  0xb0   :  { %3731 = vst [vmem:[#allocation50_spill] sm:$0xff] %v2174_v43  ;;  %1330 = vrcp.f32 %v481_v51  ;;  %v2212_v30 = vsub.f32 %v3763_v12, %v3762_v4  ;;  %v3766_v33 = vld [vmem:[#allocation105_spill] sm:$0xff]  ;;  %v3769_v23 = vld [vmem:[#allocation106_spill] sm:$0xff]  ;;  %v1323_v46 = vpop.eup %1322  ;;  %v3771_v11 = vld [vmem:[#allocation47_spill] sm:$0xff]  ;;  %v2234_v63 = vmul.f32 %v437_v42, %v437_v42  ;;  %v2236_v34 = vmul.f32 %v438_v27, %v438_v27 }
  0xb1   :  { %3733 = vst [vmem:[#allocation110_spill] sm:$0xff] %v2177_v2  ;;  %v2216_v24 = vsub.f32 %v3766_v33, %v3765_v58  ;;  %v2220_v36 = vsub.f32 %v3769_v23, %v3768_v19  ;;  %1332 = vrcp.f32 %v482_v53  ;;  %v3772_v15 = vld [vmem:[#allocation107_spill] sm:$0xff]  ;;  %v3774_v1 = vld [vmem:[#allocation48_spill] sm:$0xff]  ;;  %v3777_v29 = vld [vmem:[#allocation49_spill] sm:$0xff]  ;;  %v1325_v9 = vpop.eup %1324  ;;  %v2238_v53 = vmul.f32 %v439_v55, %v439_v55 }
  0xb2   :  { %3734 = vst [vmem:[#allocation51_spill] sm:$0xff] %v2179_v52  ;;  %v2224_v22 = vsub.f32 %v3772_v15, %v3771_v11  ;;  %v3775_v51 = vld [vmem:[#allocation108_spill] sm:$0xff]  ;;  %v3778_v44 = vld [vmem:[#allocation109_spill] sm:$0xff]  ;;  %1334 = vrcp.f32 %v483_v57  ;;  %v2240_v0 = vmul.f32 %v440_v21, %v440_v21  ;;  %v2242_v50 = vmul.f32 %v441_v41, %v441_v41  ;;  %v3793_v59 = vld [vmem:[#allocation34_spill] sm:$0xff] }
  0xb3   :  { %3738 = vst [vmem:[#allocation111_spill] sm:$0xff] %v2184_v47  ;;  %v2228_v26 = vsub.f32 %v3775_v51, %v3774_v1  ;;  %v2232_v10 = vsub.f32 %v3778_v44, %v3777_v29  ;;  %v1327_v56 = vpop.eup %1326  ;;  %v2244_v6 = vmul.f32 %v442_v32, %v442_v32  ;;  %v2246_v5 = vmul.f32 %v443_v62, %v443_v62  ;;  %v3790_v55 = vld [vmem:[#allocation60_spill] sm:$0xff]  ;;  %v3792_v20 = vld [vmem:[#allocation29_spill] sm:$0xff]  ;;  %v3800_v11 = vld [vmem:[#allocation42_spill] sm:$0xff] }
  0xb4   :  { %3739 = vst [vmem:[#allocation52_spill] sm:$0xff] %v2186_v31  ;;  %1336 = vrcp.f32 %v484_v14  ;;  %v2248_v48 = vmul.f32 %v444_v16, %v444_v16  ;;  %v2250_v57 = vmul.f32 %v445_v37, %v445_v37  ;;  %v2252_v42 = vmul.f32 %v446_v39, %v446_v39  ;;  %v3791_v21 = vld [vmem:[#allocation28_spill] sm:$0xff]  ;;  %v3794_v62 = vld [vmem:[#allocation61_spill] sm:$0xff]  ;;  %v3795_v14 = vld [vmem:[#allocation62_spill] sm:$0xff] }
  0xb5   :  { %3764 = vst [vmem:[#allocation112_spill] sm:$0xff] %v2212_v30  ;;  %v1329_v28 = vpop.eup %1328  ;;  %v493_v54 = vmul.f32 %v1323_v46, %v3790_v55  ;;  %v741_v60 = vadd.f32 1e-07, %v3791_v21  ;;  %v742_v41 = vadd.f32 1e-07, %v3792_v20  ;;  %v494_v45 = vmul.f32 %v1325_v9, %v3794_v62  ;;  %v3796_v16 = vld [vmem:[#allocation35_spill] sm:$0xff] }
  0xb6   :  { %3767 = vst [vmem:[#allocation53_spill] sm:$0xff] %v2216_v24  ;;  %v1331_v27 = vpop.eup %1330  ;;  %v743_v32 = vadd.f32 1e-07, %v3793_v59  ;;  %v495_v4 = vmul.f32 %v1327_v56, %v3795_v14  ;;  %v744_v12 = vadd.f32 1e-07, %v3796_v16  ;;  %v3797_v37 = vld [vmem:[#allocation36_spill] sm:$0xff] }
  0xb7   :  { %3770 = vst [vmem:[#allocation93_spill] sm:$0xff] %v2220_v36  ;;  %v1333_v7 = vpop.eup %1332  ;;  %v745_v58 = vadd.f32 1e-07, %v3797_v37  ;;  %v3798_v33 = vld [vmem:[#allocation68_spill] sm:$0xff]  ;;  %vm501_vm0 = vcmp.lt.f32.partialorder %v493_v54, 0.0  ;;  %v3799_v23 = vld [vmem:[#allocation41_spill] sm:$0xff]  ;;  %1338 = vrcp.f32 %v741_v60 }
  0xb8   :  { %3773 = vst [vmem:[#allocation30_spill] sm:$0xff] %v2224_v22  ;;  %v1335_v39 = vpop.eup %1334  ;;  %v496_v19 = vmul.f32 %v1329_v28, %v3798_v33  ;;  %v746_v46 = vadd.f32 1e-07, %v3799_v23  ;;  %v747_v15 = vadd.f32 1e-07, %v3800_v11  ;;  %v3801_v1 = vld [vmem:[#allocation69_spill] sm:$0xff]  ;;  %1340 = vrcp.f32 %v742_v41 }
  0xb9   :  { %3776 = vst [vmem:[#allocation94_spill] sm:$0xff] %v2228_v26  ;;  %v497_v51 = vmul.f32 %v1331_v27, %v3801_v1  ;;  %vm502_vm1 = vcmp.lt.f32.partialorder %v494_v45, 0.0  ;;  %vm503_vm2 = vcmp.lt.f32.partialorder %v495_v4, 0.0  ;;  %v3802_v29 = vld [vmem:[#allocation45_spill] sm:$0xff]  ;;  %v3803_v56 = vld [vmem:[#allocation70_spill] sm:$0xff]  ;;  %v3482_v59 = vmov 1.0  }
  0xba   :  { %3779 = vst [vmem:[#allocation31_spill] sm:$0xff] %v2232_v10  ;;  %v2267_v44 = vadd.f32 1e-07, %v3802_v29  ;;  %v1337_v9 = vpop.eup %1336  ;;  %v498_v55 = vmul.f32 %v1333_v7, %v3803_v56  ;;  %vm504_vm3 = vcmp.lt.f32.partialorder %v496_v19, 0.0  ;;  %v2270_v21 = vand.u32 2147483647, %v493_v54 }
  0xbb   :  { %3780 = vst [vmem:[#allocation95_spill] sm:$0xff] %v2234_v63  ;;  %v3804_v28 = vld [vmem:[#allocation73_spill] sm:$0xff]  ;;  %vm505_vm4 = vcmp.lt.f32.partialorder %v497_v51, 0.0  ;;  %v2274_v62 = vsel %vm501_vm0, -1.0, %v3482_v59  ;;  %v2277_v27 = vsel %vm502_vm1, -1.0, %v3482_v59  ;;  %v2280_v14 = vsel %vm503_vm2, -1.0, %v3482_v59 }
  0xbc   :  { %3781 = vst [vmem:[#allocation37_spill] sm:$0xff] %v2236_v34  ;;  %v499_v20 = vmul.f32 %v1335_v39, %v3804_v28  ;;  %v2282_v16 = vand.u32 2147483647, %v494_v45  ;;  %v2284_v7 = vand.u32 2147483647, %v495_v4  ;;  %v3805_v54 = vld [vmem:[#allocation74_spill] sm:$0xff]  ;;  %1342 = vrcp.f32 %v743_v32 }
  0xbd   :  { %3782 = vst [vmem:[#allocation96_spill] sm:$0xff] %v2238_v53  ;;  %v500_v60 = vmul.f32 %v1337_v9, %v3805_v54  ;;  %v2288_v37 = vsel %vm504_vm3, -1.0, %v3482_v59  ;;  %v2290_v39 = vand.u32 2147483647, %v496_v19  ;;  %v2292_v33 = vand.u32 2147483647, %v497_v51  ;;  %v2302_v4 = vpop.eup %1338 }
  0xbe   :  { %3783 = vst [vmem:[#allocation38_spill] sm:$0xff] %v2240_v0  ;;  %vm506_vm5 = vcmp.lt.f32.partialorder %v498_v55, 0.0  ;;  %v2295_v41 = vsel %vm505_vm4, -1.0, %v3482_v59  ;;  %v2297_v23 = vand.u32 2147483647, %v498_v55  ;;  %vm507_vm6 = vcmp.lt.f32.partialorder %v499_v20, 0.0  ;;  %v2306_v19 = vpop.eup %1340 }
  0xbf   :  { %3784 = vst [vmem:[#allocation101_spill] sm:$0xff] %v2242_v50  ;;  %v2299_v45 = vand.u32 2147483647, %v499_v20  ;;  %vm3489_vm7 = vcmp.gt.f32.partialorder %v2270_v21, 2.4142137  ;;  %1344 = vrcp.f32 %v744_v12  ;;  %vm508_vm8 = vcmp.lt.f32.partialorder %v500_v60, 0.0 }
  0xc0   :  { %3785 = vst [vmem:[#allocation39_spill] sm:$0xff] %v2244_v6  ;;  %vm3487_vm9 = vcmp.gt.f32.partialorder %v2282_v16, 2.4142137  ;;  %vm3486_vm10 = vcmp.gt.f32.partialorder %v2284_v7, 2.4142137  ;;  %1346 = vrcp.f32 %v745_v58  ;;  %vm2317_vm13 = vmxor %vm3489_vm7, %vm3491_vm12  ;;  %v2324_v29 = vsel %vm506_vm5, -1.0, %v3482_v59 }
  0xc1   :  { %3786 = vst [vmem:[#allocation102_spill] sm:$0xff] %v2246_v5  ;;  %v557_v11 = vmax.f32 %v2270_v21, 1e-30  ;;  %v558_v32 = vmax.f32 %v2282_v16, 1e-30  ;;  %1348 = vrcp.f32 %v746_v46  ;;  %vm2330_vm15 = vmxor %vm3487_vm9, %vm3491_vm12  ;;  %v589_v2 = vadd.f32 1.0, %v2270_v21 }
  0xc2   :  { %3787 = vst [vmem:[#allocation40_spill] sm:$0xff] %v2248_v48  ;;  %v559_v1 = vmax.f32 %v2284_v7, 1e-30  ;;  %v2311_v51 = vand.u32 2147483647, %v500_v60  ;;  %1350 = vrcp.f32 %v747_v15  ;;  %v2335_v56 = vpop.eup %1342  ;;  %v2339_v15 = vsel %vm507_vm6, -1.0, %v3482_v59  ;;  %vm2345_vm1 = vmxor %vm3486_vm10, %vm3491_vm12 }
  0xc3   :  { %3788 = vst [vmem:[#allocation121_spill] sm:$0xff] %v2250_v57  ;;  %vm3484_vm11 = vcmp.gt.f32.partialorder %v2290_v39, 2.4142137  ;;  %v560_v58 = vmax.f32 %v2290_v39, 1e-30  ;;  %1352 = vrcp.f32 %v557_v11  ;;  %v2354_v11 = vsel %vm508_vm8, -1.0, %v3482_v59 }
  0xc4   :  { %3789 = vst [vmem:[#allocation66_spill] sm:$0xff] %v2252_v42  ;;  %vm3485_vm14 = vcmp.gt.f32.partialorder %v2292_v33, 2.4142137  ;;  %v561_v9 = vmax.f32 %v2292_v33, 1e-30  ;;  %1354 = vrcp.f32 %v558_v32  ;;  %vm2360_vm3 = vmxor %vm3484_vm11, %vm3491_vm12  ;;  %v2377_v59 = vadd.f32 -1.0, %v2270_v21 }
  0xc5   :  { %3806 = vst [vmem:[#allocation122_spill] sm:$0xff] %v2288_v37  ;;  %vm3488_vm0 = vcmp.gt.f32.partialorder %v2297_v23, 2.4142137  ;;  %v562_v28 = vmax.f32 %v2297_v23, 1e-30  ;;  %v2350_v54 = vpop.eup %1344  ;;  %1356 = vrcp.f32 %v559_v1  ;;  %vm2371_vm5 = vmxor %vm3485_vm14, %vm3491_vm12  ;;  %v590_v5 = vadd.f32 1.0, %v2282_v16 }
  0xc6   :  { %3807 = vst [vmem:[#allocation72_spill] sm:$0xff] %v2295_v41  ;;  %vm3490_vm2 = vcmp.gt.f32.partialorder %v2299_v45, 2.4142137  ;;  %v563_v31 = vmax.f32 %v2299_v45, 1e-30  ;;  %v2365_v47 = vpop.eup %1346  ;;  %1358 = vrcp.f32 %v560_v58  ;;  %vm2386_vm11 = vmxor %vm3488_vm0, %vm3491_vm12  ;;  %v591_v50 = vadd.f32 1.0, %v2284_v7 }
  0xc7   :  { %3810 = vst [vmem:[#allocation113_spill] sm:$0xff] %v2324_v29  ;;  %vm532_vm4 = vcmp.gt.f32.partialorder %v2311_v51, 2.4142137  ;;  %v564_v32 = vmax.f32 %v2311_v51, 1e-30  ;;  %v2379_v52 = vpop.eup %1348  ;;  %1360 = vrcp.f32 %v561_v9  ;;  %vm2398_vm9 = vmxor %vm3490_vm2, %vm3491_vm12  ;;  %v592_v53 = vadd.f32 1.0, %v2290_v39 }
  0xc8   :  { %3813 = vst [vmem:[#allocation54_spill] sm:$0xff] %v2339_v15  ;;  %vm533_vm6 = vcmp.gt.f32.partialorder %v2270_v21, 0.41421357  ;;  %vm534_vm8 = vcmp.gt.f32.partialorder %v2282_v16, 0.41421357  ;;  %v2391_v58 = vpop.eup %1350  ;;  %1362 = vrcp.f32 %v562_v28  ;;  %vm2410_vm10 = vmxor %vm532_vm4, %vm3491_vm12  ;;  %v1240_v12 = vadd.f32 -1.0, %v2282_v16 }
  0xc9   :  { %3816 = vst [vmem:[#allocation114_spill] sm:$0xff] %v2354_v11  ;;  %v2403_v6 = vpop.eup %1352  ;;  %vm537_vm0 = vcmp.gt.f32.partialorder %v2292_v33, 0.41421357  ;;  %1364 = vrcp.f32 %v563_v31  ;;  %vm539_vm2 = vcmp.gt.f32.partialorder %v2299_v45, 0.41421357  ;;  %vm2423_vm7 = vmand %vm533_vm6, %vm2317_vm13  ;;  %v1241_v34 = vadd.f32 -1.0, %v2284_v7 }
  0xca   :  { %v2415_v0 = vpop.eup %1354  ;;  %vm540_vm14 = vcmp.gt.f32.partialorder %v2311_v51, 0.41421357  ;;  %1366 = vrcp.f32 %v564_v32  ;;  %vm2434_vm12 = vmand %vm534_vm8, %vm2330_vm15  ;;  %v593_v49 = vadd.f32 1.0, %v2292_v33  ;;  %vm3831_vm13 = vcmp.gt.f32.partialorder %v2284_v7, 0.41421357 }
  0xcb   :  { %v2428_v31 = vpop.eup %1356  ;;  %1368 = vrcp.f32 %v589_v2  ;;  %vm2447_vm6 = vmand %vm3831_vm13, %vm2345_vm1  ;;  %v1242_v57 = vadd.f32 -1.0, %v2290_v39  ;;  %v594_v63 = vadd.f32 1.0, %v2297_v23  ;;  %vm3834_vm15 = vcmp.gt.f32.partialorder %v2290_v39, 0.41421357 }
  0xcc   :  { %v2441_v32 = vpop.eup %1358  ;;  %1370 = vrcp.f32 %v590_v5  ;;  %vm2459_vm8 = vmand %vm3834_vm15, %vm2360_vm3  ;;  %v1243_v55 = vadd.f32 -1.0, %v2292_v33  ;;  %v1244_v10 = vadd.f32 -1.0, %v2297_v23  ;;  %v595_v26 = vadd.f32 1.0, %v2299_v45 }
  0xcd   :  { %v2453_v18 = vpop.eup %1360  ;;  %1372 = vrcp.f32 %v591_v50  ;;  %vm2472_vm1 = vmand %vm537_vm0, %vm2371_vm5  ;;  %v1245_v20 = vadd.f32 -1.0, %v2299_v45  ;;  %v1246_v36 = vadd.f32 -1.0, %v2311_v51  ;;  %v596_v24 = vadd.f32 1.0, %v2311_v51 }
  0xce   :  { %v2466_v22 = vpop.eup %1362  ;;  %1374 = vrcp.f32 %v592_v53  ;;  %vm3839_vm3 = vcmp.gt.f32.partialorder %v2297_v23, 0.41421357  ;;  %v3501_v60 = vmov 0.0   ;;  %v573_v40 = vsub.f32 0.0, %v2403_v6 }
  0xcf   :  { %v2479_v43 = vpop.eup %1364  ;;  %vm2485_vm13 = vmand %vm3839_vm3, %vm2386_vm11  ;;  %1376 = vrcp.f32 %v593_v49  ;;  %v629_v61 = vsel %vm2423_vm7, 0.7853982, %v3501_v60  ;;  %v2495_v53 = vsel %vm2434_vm12, 0.7853982, %v3501_v60  ;;  %v2500_v1 = vsel %vm2447_vm6, 0.7853982, %v3501_v60 }
  0xd0   :  { %v1367_v13 = vpop.eup %1366  ;;  %vm2506_vm11 = vmand %vm539_vm2, %vm2398_vm9  ;;  %1378 = vrcp.f32 %v594_v63  ;;  %v2514_v35 = vsel %vm2459_vm8, 0.7853982, %v3501_v60  ;;  %v2519_v38 = vsel %vm2472_vm1, 0.7853982, %v3501_v60  ;;  %v574_v63 = vsub.f32 0.0, %v2415_v0 }
  0xd1   :  { %v1369_v48 = vpop.eup %1368  ;;  %vm2525_vm9 = vmand %vm540_vm14, %vm2410_vm10  ;;  %1380 = vrcp.f32 %v595_v26  ;;  %v2533_v6 = vsel %vm2485_vm13, 0.7853982, %v3501_v60  ;;  %v2538_v17 = vsel %vm2506_vm11, 0.7853982, %v3501_v60  ;;  %v575_v3 = vsub.f32 0.0, %v2428_v31 }
  0xd2   :  { %v1371_v9 = vpop.eup %1370  ;;  %1382 = vrcp.f32 %v596_v24  ;;  %v605_v8 = vmul.f32 %v1369_v48, %v2377_v59  ;;  %v2545_v26 = vsel %vm2525_vm9, 0.7853982, %v3501_v60  ;;  %v576_v30 = vsub.f32 0.0, %v2441_v32 }
  0xd3   :  { %v1373_v0 = vpop.eup %1372  ;;  %v577_v11 = vsub.f32 0.0, %v2453_v18  ;;  %v606_v15 = vmul.f32 %v1371_v9, %v1240_v12  ;;  %vm3846_vm10 = vcmp.gt.f32.partialorder %v2270_v21, 2.4142137  ;;  %v578_v24 = vsub.f32 0.0, %v2466_v22 }
  0xd4   :  { %v2551_v29 = vsel %vm3846_vm10, 1.5707964, %v629_v61  ;;  %v1375_v41 = vpop.eup %1374  ;;  %v579_v59 = vsub.f32 0.0, %v2479_v43  ;;  %v607_v31 = vmul.f32 %v1373_v0, %v1241_v34  ;;  %v613_v48 = vsel %vm2423_vm7, %v605_v8, %v2270_v21  ;;  %vm3847_vm14 = vmmov %vm3846_vm10 }
  0xd5   :  { %v1377_v60 = vpop.eup %1376  ;;  %v580_v37 = vsub.f32 0.0, %v1367_v13  ;;  %v608_v32 = vmul.f32 %v1375_v41, %v1242_v57  ;;  %v614_v18 = vsel %vm2434_vm12, %v606_v15, %v2282_v16  ;;  %v2563_v61 = vsel %vm3847_vm14, %v573_v40, %v613_v48 }
  0xd6   :  { %v1379_v12 = vpop.eup %1378  ;;  %v609_v22 = vmul.f32 %v1377_v60, %v1243_v55  ;;  %v615_v43 = vsel %vm2447_vm6, %v607_v31, %v2284_v7  ;;  %vm3848_vm0 = vcmp.gt.f32.partialorder %v2282_v16, 2.4142137  ;;  %v2574_v13 = vmul.f32 %v2563_v61, %v2563_v61 }
  0xd7   :  { %v2570_v8 = vsel %vm3848_vm0, %v574_v63, %v614_v18  ;;  %v1381_v34 = vpop.eup %1380  ;;  %v610_v57 = vmul.f32 %v1379_v12, %v1244_v10  ;;  %v616_v40 = vsel %vm2459_vm8, %v608_v32, %v2290_v39  ;;  %vm3849_vm7 = vcmp.gt.f32.partialorder %v2284_v7, 2.4142137  ;;  %vm3854_vm15 = vmmov %vm3848_vm0 }
  0xd8   :  { %v2581_v42 = vsel %vm3849_vm7, %v575_v3, %v615_v43  ;;  %v2585_v21 = vmul.f32 %v2570_v8, %v2570_v8  ;;  %v1383_v41 = vpop.eup %1382  ;;  %v611_v15 = vmul.f32 %v1381_v34, %v1245_v20  ;;  %v617_v28 = vsel %vm2472_vm1, %v609_v22, %v2292_v33  ;;  %vm3855_vm8 = vmmov %vm3849_vm7 }
  0xd9   :  { %vm3850_vm12 = vcmp.gt.f32.partialorder %v2290_v39, 2.4142137  ;;  %v2596_v46 = vmul.f32 %v2581_v42, %v2581_v42  ;;  %v612_v3 = vmul.f32 %v1383_v41, %v1246_v36  ;;  %v618_v2 = vsel %vm2485_vm13, %v610_v57, %v2297_v23 }
  0xda   :  { %v2592_v10 = vsel %vm3850_vm12, %v576_v30, %v616_v40  ;;  %vm3851_vm2 = vcmp.gt.f32.partialorder %v2292_v33, 2.4142137  ;;  %v619_v30 = vsel %vm2506_vm11, %v611_v15, %v2299_v45  ;;  %vm3852_vm5 = vcmp.gt.f32.partialorder %v2297_v23, 2.4142137  ;;  %vm3856_vm1 = vmmov %vm3850_vm12  ;;  %v1450_v33 = vld [vmem:[#allocation2 + $0x80] sm:$0xff] }
  0xdb   :  { %v2603_v55 = vsel %vm3851_vm2, %v577_v11, %v617_v28  ;;  %v2607_v5 = vmul.f32 %v2592_v10, %v2592_v10  ;;  %v2614_v20 = vsel %vm3852_vm5, %v578_v24, %v618_v2  ;;  %v653_v50 = vmul.f32 0.080537446, %v2574_v13  ;;  %vm3857_vm3 = vmmov %vm3851_vm2 }
  0xdc   :  { %v2618_v36 = vmul.f32 %v2603_v55, %v2603_v55  ;;  %v620_v11 = vsel %vm2525_vm9, %v612_v3, %v2311_v51  ;;  %vm3853_vm6 = vcmp.gt.f32.partialorder %v2299_v45, 2.4142137  ;;  %v2630_v49 = vmul.f32 %v2614_v20, %v2614_v20  ;;  %vm3858_vm13 = vmmov %vm3852_vm5 }
  0xdd   :  { %v2626_v60 = vsel %vm3853_vm6, %v579_v59, %v619_v30  ;;  %v654_v63 = vmul.f32 0.080537446, %v2585_v21  ;;  %v2635_v9 = vsel %vm532_vm4, %v580_v37, %v620_v11  ;;  %v655_v25 = vmul.f32 0.080537446, %v2596_v46  ;;  %vm3859_vm11 = vmmov %vm3853_vm6 }
  0xde   :  { %v2639_v0 = vmul.f32 %v2626_v60, %v2626_v60  ;;  %v656_v24 = vmul.f32 0.080537446, %v2607_v5  ;;  %v2645_v59 = vmul.f32 %v2635_v9, %v2635_v9  ;;  %v657_v31 = vmul.f32 0.080537446, %v2618_v36 }
  0xdf   :  { %v658_v48 = vmul.f32 0.080537446, %v2630_v49  ;;  %v1247_v32 = vadd.f32 -0.13877685, %v653_v50  ;;  %v1248_v18 = vadd.f32 -0.13877685, %v654_v63  ;;  %1384 = vrcp.f32 %v2267_v44 }
  0xe0   :  { %v659_v37 = vmul.f32 0.080537446, %v2639_v0  ;;  %v1249_v12 = vadd.f32 -0.13877685, %v655_v25  ;;  %v660_v22 = vmul.f32 0.080537446, %v2645_v59  ;;  %v2692_v23 = vmul.f32 %v1450_v33, %v2302_v4 }
  0xe1   :  { %v1250_v43 = vadd.f32 -0.13877685, %v656_v24  ;;  %v1251_v34 = vadd.f32 -0.13877685, %v657_v31  ;;  %v669_v57 = vmul.f32 %v1247_v32, %v2574_v13  ;;  %v1252_v40 = vadd.f32 -0.13877685, %v658_v48 }
  0xe2   :  { %v1253_v41 = vadd.f32 -0.13877685, %v659_v37  ;;  %v670_v15 = vmul.f32 %v1248_v18, %v2585_v21  ;;  %v671_v28 = vmul.f32 %v1249_v12, %v2596_v46  ;;  %v1254_v3 = vadd.f32 -0.13877685, %v660_v22 }
  0xe3   :  { %v672_v2 = vmul.f32 %v1250_v43, %v2607_v5  ;;  %v673_v30 = vmul.f32 %v1251_v34, %v2618_v36  ;;  %v677_v50 = vadd.f32 0.19977711, %v669_v57  ;;  %v674_v44 = vmul.f32 %v1252_v40, %v2630_v49 }
  0xe4   :  { %v675_v11 = vmul.f32 %v1253_v41, %v2639_v0  ;;  %v678_v63 = vadd.f32 0.19977711, %v670_v15  ;;  %v679_v25 = vadd.f32 0.19977711, %v671_v28  ;;  %v638_v24 = vsel %vm3854_vm15, 1.5707964, %v2495_v53 }
  0xe5   :  { %v676_v31 = vmul.f32 %v1254_v3, %v2645_v59  ;;  %v680_v48 = vadd.f32 0.19977711, %v672_v2  ;;  %v681_v32 = vadd.f32 0.19977711, %v673_v30  ;;  %v2663_v37 = vpop.eup %1384  ;;  %v639_v18 = vsel %vm3855_vm8, 1.5707964, %v2500_v1 }
  0xe6   :  { %v682_v12 = vadd.f32 0.19977711, %v674_v44  ;;  %v683_v22 = vadd.f32 0.19977711, %v675_v11  ;;  %v685_v43 = vmul.f32 %v677_v50, %v2574_v13  ;;  %v686_v57 = vmul.f32 %v678_v63, %v2585_v21  ;;  %v1452_v50 = vld [vmem:[#allocation2 + $0x90] sm:$0xff] }
  0xe7   :  { %v684_v34 = vadd.f32 0.19977711, %v676_v31  ;;  %v687_v16 = vmul.f32 %v679_v25, %v2596_v46  ;;  %v688_v53 = vmul.f32 %v680_v48, %v2607_v5  ;;  %v640_v40 = vsel %vm3856_vm1, 1.5707964, %v2514_v35 }
  0xe8   :  { %v641_v7 = vsel %vm3857_vm3, 1.5707964, %v2519_v38  ;;  %v642_v1 = vsel %vm3858_vm13, 1.5707964, %v2533_v6  ;;  %v689_v41 = vmul.f32 %v681_v32, %v2618_v36  ;;  %v643_v15 = vsel %vm3859_vm11, 1.5707964, %v2538_v17 }
  0xe9   :  { %v690_v28 = vmul.f32 %v682_v12, %v2630_v49  ;;  %v691_v3 = vmul.f32 %v683_v22, %v2639_v0  ;;  %v692_v35 = vmul.f32 %v684_v34, %v2645_v59  ;;  %v644_v38 = vsel %vm532_vm4, 1.5707964, %v2545_v26  ;;  %v1451_v6 = vld [vmem:[#allocation2 + $0x88] sm:$0xff] }
  0xea   :  { %v1255_v39 = vadd.f32 -0.3333295, %v685_v43  ;;  %v2695_v2 = vmul.f32 %v1451_v6, %v2306_v19  ;;  %v1256_v17 = vadd.f32 -0.3333295, %v686_v57  ;;  %v1257_v45 = vadd.f32 -0.3333295, %v687_v16 }
  0xeb   :  { %v1258_v30 = vadd.f32 -0.3333295, %v688_v53  ;;  %v2698_v44 = vmul.f32 %v1452_v50, %v2335_v56  ;;  %v1259_v11 = vadd.f32 -0.3333295, %v689_v41  ;;  %v709_v51 = vmul.f32 %v2574_v13, %v2563_v61  ;;  %v1455_v53 = vld [vmem:[#allocation2 + $0xa8] sm:$0xff]  ;;  %v3861_v50 = vld [vmem:[#allocation122_spill] sm:$0xff] }
  0xec   :  { %v710_v26 = vmul.f32 %v2585_v21, %v2570_v8  ;;  %v711_v4 = vmul.f32 %v2596_v46, %v2581_v42  ;;  %v1260_v63 = vadd.f32 -0.3333295, %v690_v28  ;;  %v1261_v19 = vadd.f32 -0.3333295, %v691_v3 }
  0xed   :  { %v1262_v25 = vadd.f32 -0.3333295, %v692_v35  ;;  %v712_v31 = vmul.f32 %v2607_v5, %v2592_v10  ;;  %v713_v56 = vmul.f32 %v2618_v36, %v2603_v55  ;;  %v714_v48 = vmul.f32 %v2630_v49, %v2614_v20 }
  0xee   :  { %v715_v13 = vmul.f32 %v2639_v0, %v2626_v60  ;;  %v716_v21 = vmul.f32 %v2645_v59, %v2635_v9  ;;  %v701_v46 = vadd.f32 %v2551_v29, %v2563_v61  ;;  %v702_v32 = vadd.f32 %v638_v24, %v2570_v8 }
  0xef   :  { %v703_v12 = vadd.f32 %v639_v18, %v2581_v42  ;;  %v717_v5 = vmul.f32 %v1255_v39, %v709_v51  ;;  %v704_v22 = vadd.f32 %v640_v40, %v2592_v10  ;;  %v705_v36 = vadd.f32 %v641_v7, %v2603_v55  ;;  %v1453_v42 = vld [vmem:[#allocation2 + $0x98] sm:$0xff]  ;;  %v1454_v10 = vld [vmem:[#allocation2 + $0xa0] sm:$0xff] }
  0xf0   :  { %v718_v43 = vmul.f32 %v1256_v17, %v710_v26  ;;  %v719_v49 = vmul.f32 %v1257_v45, %v711_v4  ;;  %v706_v34 = vadd.f32 %v642_v1, %v2614_v20  ;;  %v707_v0 = vadd.f32 %v643_v15, %v2626_v60  ;;  %v1456_v60 = vld [vmem:[#allocation2 + $0xb0] sm:$0xff]  ;;  %v1457_v1 = vld [vmem:[#allocation2 + $0xb8] sm:$0xff] }
  0xf1   :  { %v708_v59 = vadd.f32 %v644_v38, %v2635_v9  ;;  %v720_v57 = vmul.f32 %v1258_v30, %v712_v31  ;;  %v721_v16 = vmul.f32 %v1259_v11, %v713_v56  ;;  %v722_v29 = vmul.f32 %v1260_v63, %v714_v48  ;;  %v3869_v48 = vld [vmem:[#allocation54_spill] sm:$0xff] }
  0xf2   :  { %v723_v61 = vmul.f32 %v1261_v19, %v715_v13  ;;  %v724_v8 = vmul.f32 %v1262_v25, %v716_v21  ;;  %v725_v24 = vadd.f32 %v717_v5, %v701_v46  ;;  %v760_v18 = vmul.f32 %v1453_v42, %v2350_v54 }
  0xf3   :  { %v761_v55 = vmul.f32 %v1454_v10, %v2365_v47  ;;  %v762_v40 = vmul.f32 %v1455_v53, %v2379_v52  ;;  %v726_v20 = vadd.f32 %v718_v43, %v702_v32  ;;  %v727_v7 = vadd.f32 %v719_v49, %v703_v12  ;;  %v3873_v12 = vld [vmem:[#allocation114_spill] sm:$0xff] }
  0xf4   :  { %v763_v9 = vmul.f32 %v1456_v60, %v2391_v58  ;;  %v764_v41 = vmul.f32 %v1457_v1, %v2663_v37  ;;  %v728_v15 = vadd.f32 %v720_v57, %v704_v22  ;;  %vm765_vm4 = vcmp.lt.f32.partialorder %v2692_v23, 0.0 }
  0xf5   :  { %vm766_vm9 = vcmp.lt.f32.partialorder %v2695_v2, 0.0  ;;  %vm767_vm10 = vcmp.lt.f32.partialorder %v2698_v44, 0.0  ;;  %v729_v54 = vadd.f32 %v721_v16, %v705_v36  ;;  %v730_v47 = vadd.f32 %v722_v29, %v706_v34 }
  0xf6   :  { %v731_v28 = vadd.f32 %v723_v61, %v707_v0  ;;  %v732_v3 = vadd.f32 %v724_v8, %v708_v59  ;;  %v2734_v52 = vmul.f32 %v725_v24, %v2274_v62  ;;  %vm768_vm14 = vcmp.lt.f32.partialorder %v760_v18, 0.0 }
  0xf7   :  { %vm769_vm0 = vcmp.lt.f32.partialorder %v761_v55, 0.0  ;;  %vm770_vm7 = vcmp.lt.f32.partialorder %v762_v40, 0.0  ;;  %v2737_v58 = vmul.f32 %v726_v20, %v2277_v27  ;;  %v2740_v37 = vmul.f32 %v727_v7, %v2280_v14 }
  0xf8   :  { %vm771_vm12 = vcmp.lt.f32.partialorder %v763_v9, 0.0  ;;  %vm772_vm2 = vcmp.lt.f32.partialorder %v764_v41, 0.0  ;;  %v3860_v35 = vmov 1.0   ;;  %v2752_v33 = vand.u32 2147483647, %v2692_v23 }
  0xf9   :  { %v2743_v38 = vsel %vm765_vm4, -1.0, %v3860_v35  ;;  %v2746_v39 = vsel %vm766_vm9, -1.0, %v3860_v35  ;;  %v2749_v62 = vsel %vm767_vm10, -1.0, %v3860_v35  ;;  %v2755_v27 = vsel %vm768_vm14, -1.0, %v3860_v35 }
  0xfa   :  { %v2758_v14 = vsel %vm769_vm0, -1.0, %v3860_v35  ;;  %v2761_v6 = vsel %vm770_vm7, -1.0, %v3860_v35  ;;  %v2764_v17 = vand.u32 2147483647, %v2695_v2  ;;  %v2767_v45 = vsel %vm771_vm12, -1.0, %v3860_v35  ;;  %v3862_v2 = vld [vmem:[#allocation72_spill] sm:$0xff] }
  0xfb   :  { %v2770_v30 = vsel %vm772_vm2, -1.0, %v3860_v35  ;;  %v2773_v23 = vand.u32 2147483647, %v2698_v44  ;;  %vm3506_vm5 = vcmp.gt.f32.partialorder %v2752_v33, 2.4142137  ;;  %v2777_v11 = vmul.f32 %v728_v15, %v3861_v50  ;;  %v3864_v44 = vld [vmem:[#allocation113_spill] sm:$0xff] }
  0xfc   :  { %v2779_v51 = vand.u32 2147483647, %v760_v18  ;;  %v2781_v26 = vand.u32 2147483647, %v761_v55  ;;  %vm3505_vm6 = vcmp.gt.f32.partialorder %v2764_v17, 2.4142137  ;;  %v2785_v4 = vmul.f32 %v729_v54, %v3862_v2 }
  0xfd   :  { %v2787_v63 = vand.u32 2147483647, %v762_v40  ;;  %v2789_v19 = vand.u32 2147483647, %v763_v9  ;;  %vm3503_vm15 = vcmp.gt.f32.partialorder %v2773_v23, 2.4142137  ;;  %v2793_v25 = vmul.f32 %v730_v47, %v3864_v44 }
  0xfe   :  { %3863 = vst [vmem:[#allocation55_spill] sm:$0xff] %v2785_v4  ;;  %v2795_v31 = vand.u32 2147483647, %v764_v41  ;;  %vm3504_vm8 = vcmp.gt.f32.partialorder %v2779_v51, 2.4142137  ;;  %vm3866_vm3 = vmmov 1   ;;  %v2807_v13 = vmul.f32 %v731_v28, %v3869_v48 }
  0xff   :  { %3865 = vst [vmem:[#allocation123_spill] sm:$0xff] %v2793_v25  ;;  %vm3507_vm1 = vcmp.gt.f32.partialorder %v2781_v26, 2.4142137  ;;  %vm2802_vm13 = vmxor %vm3506_vm5, %vm3866_vm3  ;;  %vm3508_vm11 = vcmp.gt.f32.partialorder %v2787_v63, 2.4142137  ;;  %v2820_v5 = vmul.f32 %v732_v3, %v3873_v12  ;;  %v1263_v24 = vadd.f32 -1.0, %v2752_v33 }
 0x100   :  { %3870 = vst [vmem:[#allocation78_spill] sm:$0xff] %v2807_v13  ;;  %vm2813_vm4 = vmxor %vm3505_vm6, %vm3866_vm3  ;;  %v821_v46 = vmax.f32 %v2752_v33, 1e-30  ;;  %v822_v32 = vmax.f32 %v2764_v17, 1e-30  ;;  %v853_v42 = vadd.f32 1.0, %v2752_v33 }
 0x101   :  { %3874 = vst [vmem:[#allocation124_spill] sm:$0xff] %v2820_v5  ;;  %vm3509_vm9 = vcmp.gt.f32.partialorder %v2789_v19, 2.4142137  ;;  %vm2826_vm10 = vmxor %vm3503_vm15, %vm3866_vm3  ;;  %v823_v36 = vmax.f32 %v2773_v23, 1e-30  ;;  %v1264_v10 = vadd.f32 -1.0, %v2764_v17 }
 0x102   :  { %v824_v43 = vmax.f32 %v2779_v51, 1e-30  ;;  %vm796_vm14 = vcmp.gt.f32.partialorder %v2795_v31, 2.4142137  ;;  %vm797_vm0 = vcmp.gt.f32.partialorder %v2752_v33, 0.41421357  ;;  %vm2837_vm7 = vmxor %vm3504_vm8, %vm3866_vm3  ;;  %1386 = vrcp.f32 %v821_v46 }
 0x103   :  { %v825_v34 = vmax.f32 %v2781_v26, 1e-30  ;;  %vm798_vm12 = vcmp.gt.f32.partialorder %v2764_v17, 0.41421357  ;;  %vm2847_vm15 = vmxor %vm3507_vm1, %vm3866_vm3  ;;  %v826_v59 = vmax.f32 %v2787_v63, 1e-30  ;;  %1388 = vrcp.f32 %v822_v32 }
 0x104   :  { %vm2857_vm5 = vmxor %vm3508_vm11, %vm3866_vm3  ;;  %v827_v16 = vmax.f32 %v2789_v19, 1e-30  ;;  %1390 = vrcp.f32 %v823_v36  ;;  %vm802_vm1 = vcmp.gt.f32.partialorder %v2787_v63, 0.41421357  ;;  %vm803_vm2 = vcmp.gt.f32.partialorder %v2789_v19, 0.41421357 }
 0x105   :  { %vm2867_vm8 = vmxor %vm3509_vm9, %vm3866_vm3  ;;  %v828_v61 = vmax.f32 %v2795_v31, 1e-30  ;;  %1392 = vrcp.f32 %v824_v43  ;;  %vm804_vm11 = vcmp.gt.f32.partialorder %v2795_v31, 0.41421357  ;;  %v2892_v55 = vadd.f32 -1.0, %v2773_v23 }
 0x106   :  { %vm2876_vm6 = vmxor %vm796_vm14, %vm3866_vm3  ;;  %1394 = vrcp.f32 %v825_v34  ;;  %v854_v53 = vadd.f32 1.0, %v2764_v17  ;;  %v2906_v7 = vadd.f32 -1.0, %v2779_v51  ;;  %v2909_v60 = vadd.f32 -1.0, %v2781_v26 }
 0x107   :  { %vm2886_vm9 = vmand %vm797_vm0, %vm2802_vm13  ;;  %1396 = vrcp.f32 %v826_v59  ;;  %v855_v9 = vadd.f32 1.0, %v2773_v23  ;;  %vm3891_vm13 = vcmp.gt.f32.partialorder %v2773_v23, 0.41421357  ;;  %v2923_v15 = vadd.f32 -1.0, %v2787_v63 }
 0x108   :  { %v2895_v40 = vpop.eup %1386  ;;  %vm2901_vm3 = vmand %vm798_vm12, %vm2813_vm4  ;;  %1398 = vrcp.f32 %v827_v16  ;;  %v2926_v54 = vadd.f32 -1.0, %v2789_v19  ;;  %v856_v47 = vadd.f32 1.0, %v2779_v51  ;;  %vm3894_vm4 = vcmp.gt.f32.partialorder %v2779_v51, 0.41421357 }
 0x109   :  { %v2912_v1 = vpop.eup %1388  ;;  %vm2918_vm0 = vmand %vm3891_vm13, %vm2826_vm10  ;;  %1400 = vrcp.f32 %v828_v61  ;;  %v2940_v35 = vadd.f32 -1.0, %v2795_v31  ;;  %v857_v50 = vadd.f32 1.0, %v2781_v26  ;;  %v858_v2 = vadd.f32 1.0, %v2787_v63 }
 0x10a   :  { %v2929_v28 = vpop.eup %1390  ;;  %vm2935_vm12 = vmand %vm3894_vm4, %vm2837_vm7  ;;  %1402 = vrcp.f32 %v853_v42  ;;  %vm3897_vm10 = vcmp.gt.f32.partialorder %v2781_v26, 0.41421357  ;;  %v859_v48 = vadd.f32 1.0, %v2789_v19  ;;  %v860_v21 = vadd.f32 1.0, %v2795_v31 }
 0x10b   :  { %v2944_v44 = vpop.eup %1392  ;;  %vm2950_vm13 = vmand %vm3897_vm10, %vm2847_vm15  ;;  %1404 = vrcp.f32 %v854_v53  ;;  %v3900_v46 = vmov 0.0   ;;  %v837_v36 = vsub.f32 0.0, %v2895_v40  ;;  %v838_v59 = vsub.f32 0.0, %v2912_v1 }
 0x10c   :  { %v893_v32 = vsel %vm2886_vm9, 0.7853982, %v3900_v46  ;;  %v2959_v12 = vpop.eup %1394  ;;  %vm2965_vm7 = vmand %vm802_vm1, %vm2857_vm5  ;;  %1406 = vrcp.f32 %v855_v9  ;;  %v894_v43 = vsel %vm2901_vm3, 0.7853982, %v3900_v46  ;;  %v895_v49 = vsel %vm2918_vm0, 0.7853982, %v3900_v46 }
 0x10d   :  { %v2976_v34 = vpop.eup %1396  ;;  %vm2982_vm5 = vmand %vm803_vm2, %vm2867_vm8  ;;  %1408 = vrcp.f32 %v856_v47  ;;  %v896_v57 = vsel %vm2935_vm12, 0.7853982, %v3900_v46  ;;  %v897_v16 = vsel %vm2950_vm13, 0.7853982, %v3900_v46  ;;  %v839_v42 = vsub.f32 0.0, %v2929_v28 }
 0x10e   :  { %v1399_v61 = vpop.eup %1398  ;;  %vm2997_vm15 = vmand %vm804_vm11, %vm2876_vm6  ;;  %1410 = vrcp.f32 %v857_v50  ;;  %v898_v53 = vsel %vm2965_vm7, 0.7853982, %v3900_v46  ;;  %v899_v40 = vsel %vm2982_vm5, 0.7853982, %v3900_v46  ;;  %v840_v8 = vsub.f32 0.0, %v2944_v44 }
 0x10f   :  { %v1401_v9 = vpop.eup %1400  ;;  %1412 = vrcp.f32 %v858_v2  ;;  %v900_v1 = vsel %vm2997_vm15, 0.7853982, %v3900_v46  ;;  %vm3907_vm6 = vcmp.gt.f32.partialorder %v2752_v33, 2.4142137  ;;  %v841_v50 = vsub.f32 0.0, %v2959_v12 }
 0x110   :  { %v3014_v47 = vsel %vm3907_vm6, 1.5707964, %v893_v32  ;;  %v1403_v28 = vpop.eup %1402  ;;  %1414 = vrcp.f32 %v859_v48  ;;  %vm3908_vm8 = vcmp.gt.f32.partialorder %v2764_v17, 2.4142137  ;;  %vm3909_vm1 = vcmp.gt.f32.partialorder %v2773_v23, 2.4142137 }
 0x111   :  { %v3019_v5 = vsel %vm3908_vm8, 1.5707964, %v894_v43  ;;  %v3023_v44 = vsel %vm3909_vm1, 1.5707964, %v895_v49  ;;  %v1405_v2 = vpop.eup %1404  ;;  %v842_v13 = vsub.f32 0.0, %v2976_v34  ;;  %1416 = vrcp.f32 %v860_v21 }
 0x112   :  { %v869_v46 = vmul.f32 %v1403_v28, %v1263_v24  ;;  %vm3910_vm11 = vcmp.gt.f32.partialorder %v2779_v51, 2.4142137  ;;  %v1407_v25 = vpop.eup %1406  ;;  %v843_v12 = vsub.f32 0.0, %v1399_v61  ;;  %v870_v48 = vmul.f32 %v1405_v2, %v1264_v10 }
 0x113   :  { %v3028_v32 = vsel %vm3910_vm11, 1.5707964, %v896_v57  ;;  %vm3911_vm2 = vcmp.gt.f32.partialorder %v2781_v26, 2.4142137  ;;  %vm3912_vm4 = vcmp.gt.f32.partialorder %v2787_v63, 2.4142137  ;;  %v1409_v4 = vpop.eup %1408  ;;  %v871_v34 = vmul.f32 %v1407_v25, %v2892_v55 }
 0x114   :  { %v3032_v43 = vsel %vm3911_vm2, 1.5707964, %v897_v16  ;;  %v3036_v49 = vsel %vm3912_vm4, 1.5707964, %v898_v53  ;;  %v877_v24 = vsel %vm2886_vm9, %v869_v46, %v2752_v33  ;;  %vm3913_vm10 = vcmp.gt.f32.partialorder %v2789_v19, 2.4142137  ;;  %v1411_v57 = vpop.eup %1410  ;;  %vm3914_vm9 = vmmov %vm3908_vm8 }
 0x115   :  { %v3044_v21 = vsel %vm3913_vm10, 1.5707964, %v899_v40  ;;  %v3048_v10 = vsel %vm796_vm14, 1.5707964, %v900_v1  ;;  %v844_v16 = vsub.f32 0.0, %v1401_v9  ;;  %v872_v61 = vmul.f32 %v1409_v4, %v2906_v7  ;;  %v1413_v55 = vpop.eup %1412 }
 0x116   :  { %v878_v25 = vsel %vm2901_vm3, %v870_v48, %v2764_v17  ;;  %v3056_v18 = vsel %vm3907_vm6, %v837_v36, %v877_v24  ;;  %v873_v53 = vmul.f32 %v1411_v57, %v2909_v60  ;;  %v879_v40 = vsel %vm2918_vm0, %v871_v34, %v2773_v23  ;;  %v1415_v20 = vpop.eup %1414  ;;  %vm3915_vm3 = vmmov %vm3909_vm1 }
 0x117   :  { %v3064_v9 = vsel %vm3914_vm9, %v838_v59, %v878_v25  ;;  %v3068_v4 = vmul.f32 %v3056_v18, %v3056_v18  ;;  %v874_v33 = vmul.f32 %v1413_v55, %v2923_v15  ;;  %v880_v7 = vsel %vm2935_vm12, %v872_v61, %v2779_v51  ;;  %v1417_v41 = vpop.eup %1416  ;;  %vm3916_vm0 = vmmov %vm3910_vm11 }
 0x118   :  { %v3076_v60 = vsel %vm3915_vm3, %v839_v42, %v879_v40  ;;  %v3080_v17 = vmul.f32 %v3064_v9, %v3064_v9  ;;  %v875_v36 = vmul.f32 %v1415_v20, %v2926_v54  ;;  %v881_v59 = vsel %vm2950_vm13, %v873_v53, %v2781_v26  ;;  %vm3917_vm12 = vmmov %vm3911_vm2 }
 0x119   :  { %v3088_v15 = vsel %vm3916_vm0, %v840_v8, %v880_v7  ;;  %v3092_v23 = vmul.f32 %v3076_v60, %v3076_v60  ;;  %v876_v3 = vmul.f32 %v1417_v41, %v2940_v35  ;;  %v882_v42 = vsel %vm2965_vm7, %v874_v33, %v2787_v63  ;;  %vm3918_vm13 = vmmov %vm3912_vm4 }
 0x11a   :  { %v3100_v54 = vsel %vm3917_vm12, %v841_v50, %v881_v59  ;;  %v3104_v56 = vmul.f32 %v3088_v15, %v3088_v15  ;;  %v883_v51 = vsel %vm2982_vm5, %v875_v36, %v2789_v19  ;;  %v3111_v8 = vsel %vm3918_vm13, %v842_v13, %v882_v42  ;;  %vm3919_vm7 = vmmov %vm3913_vm10 }
 0x11b   :  { %v3115_v35 = vmul.f32 %v3100_v54, %v3100_v54  ;;  %v917_v26 = vmul.f32 0.080537446, %v3068_v4  ;;  %v884_v22 = vsel %vm2997_vm15, %v876_v3, %v2795_v31  ;;  %v3123_v1 = vsel %vm3919_vm7, %v843_v12, %v883_v51 }
 0x11c   :  { %v3127_v0 = vmul.f32 %v3111_v8, %v3111_v8  ;;  %v918_v63 = vmul.f32 0.080537446, %v3080_v17  ;;  %v3132_v13 = vsel %vm796_vm14, %v844_v16, %v884_v22  ;;  %v915_v28 = vmul.f32 %v3123_v1, %v3123_v1 }
 0x11d   :  { %v919_v29 = vmul.f32 0.080537446, %v3092_v23  ;;  %v920_v50 = vmul.f32 0.080537446, %v3104_v56  ;;  %v916_v19 = vmul.f32 %v3132_v13, %v3132_v13  ;;  %v921_v2 = vmul.f32 0.080537446, %v3115_v35 }
 0x11e   :  { %v922_v46 = vmul.f32 0.080537446, %v3127_v0  ;;  %v1271_v12 = vadd.f32 -0.13877685, %v917_v26  ;;  %v923_v48 = vmul.f32 0.080537446, %v915_v28  ;;  %v965_v24 = vadd.f32 %v3014_v47, %v3056_v18 }
 0x11f   :  { %v1272_v34 = vadd.f32 -0.13877685, %v918_v63  ;;  %v1273_v31 = vadd.f32 -0.13877685, %v919_v29  ;;  %v924_v57 = vmul.f32 0.080537446, %v916_v19 }
 0x120   :  { %v1274_v16 = vadd.f32 -0.13877685, %v920_v50  ;;  %v1275_v61 = vadd.f32 -0.13877685, %v921_v2  ;;  %v933_v25 = vmul.f32 %v1271_v12, %v3068_v4  ;;  %v1276_v55 = vadd.f32 -0.13877685, %v922_v46 }
 0x121   :  { %v1277_v53 = vadd.f32 -0.13877685, %v923_v48  ;;  %v934_v40 = vmul.f32 %v1272_v34, %v3080_v17  ;;  %v935_v20 = vmul.f32 %v1273_v31, %v3092_v23  ;;  %v1278_v33 = vadd.f32 -0.13877685, %v924_v57 }
 0x122   :  { %v936_v7 = vmul.f32 %v1274_v16, %v3104_v56  ;;  %v937_v41 = vmul.f32 %v1275_v61, %v3115_v35  ;;  %v941_v36 = vadd.f32 0.19977711, %v933_v25  ;;  %v938_v59 = vmul.f32 %v1276_v55, %v3127_v0 }
 0x123   :  { %v939_v47 = vmul.f32 %v1277_v53, %v915_v28  ;;  %v942_v3 = vadd.f32 0.19977711, %v934_v40  ;;  %v943_v42 = vadd.f32 0.19977711, %v935_v20  ;;  %v940_v51 = vmul.f32 %v1278_v33, %v916_v19 }
 0x124   :  { %v944_v26 = vadd.f32 0.19977711, %v936_v7  ;;  %v945_v22 = vadd.f32 0.19977711, %v937_v41  ;;  %v949_v63 = vmul.f32 %v941_v36, %v3068_v4  ;;  %v946_v29 = vadd.f32 0.19977711, %v938_v59 }
 0x125   :  { %v947_v50 = vadd.f32 0.19977711, %v939_v47  ;;  %v950_v2 = vmul.f32 %v942_v3, %v3080_v17  ;;  %v951_v46 = vmul.f32 %v943_v42, %v3092_v23  ;;  %v948_v12 = vadd.f32 0.19977711, %v940_v51 }
 0x126   :  { %v952_v48 = vmul.f32 %v944_v26, %v3104_v56  ;;  %v953_v34 = vmul.f32 %v945_v22, %v3115_v35  ;;  %v1279_v31 = vadd.f32 -0.3333295, %v949_v63  ;;  %v954_v57 = vmul.f32 %v946_v29, %v3127_v0 }
 0x127   :  { %v955_v16 = vmul.f32 %v947_v50, %v915_v28  ;;  %v1280_v61 = vadd.f32 -0.3333295, %v950_v2  ;;  %v1281_v25 = vadd.f32 -0.3333295, %v951_v46  ;;  %v956_v55 = vmul.f32 %v948_v12, %v916_v19 }
 0x128   :  { %v1282_v53 = vadd.f32 -0.3333295, %v952_v48  ;;  %v1283_v40 = vadd.f32 -0.3333295, %v953_v34  ;;  %v966_v20 = vadd.f32 %v3019_v5, %v3064_v9  ;;  %v1284_v33 = vadd.f32 -0.3333295, %v954_v57 }
 0x129   :  { %v1285_v7 = vadd.f32 -0.3333295, %v955_v16  ;;  %v967_v41 = vadd.f32 %v3023_v44, %v3076_v60  ;;  %v968_v36 = vadd.f32 %v3028_v32, %v3088_v15  ;;  %v1286_v59 = vadd.f32 -0.3333295, %v956_v55  ;;  %v3921_v57 = vld [vmem:[#allocation123_spill] sm:$0xff]  ;;  %v3922_v16 = vld [vmem:[#allocation78_spill] sm:$0xff] }
 0x12a   :  { %v969_v47 = vadd.f32 %v3032_v43, %v3100_v54  ;;  %v970_v3 = vadd.f32 %v3036_v49, %v3111_v8  ;;  %v971_v42 = vadd.f32 %v3044_v21, %v3123_v1  ;;  %v972_v5 = vadd.f32 %v3048_v10, %v3132_v13 }
 0x12b   :  { %v973_v51 = vmul.f32 %v3068_v4, %v3056_v18  ;;  %v974_v44 = vmul.f32 %v3080_v17, %v3064_v9  ;;  %v975_v32 = vmul.f32 %v3092_v23, %v3076_v60  ;;  %v976_v43 = vmul.f32 %v3104_v56, %v3088_v15 }
 0x12c   :  { %v977_v49 = vmul.f32 %v3115_v35, %v3100_v54  ;;  %v978_v21 = vmul.f32 %v3127_v0, %v3111_v8  ;;  %v979_v10 = vmul.f32 %v915_v28, %v3123_v1  ;;  %v980_v26 = vmul.f32 %v916_v19, %v3132_v13 }
 0x12d   :  { %v981_v18 = vmul.f32 %v1279_v31, %v973_v51  ;;  %v982_v4 = vmul.f32 %v1280_v61, %v974_v44  ;;  %v983_v22 = vmul.f32 %v1281_v25, %v975_v32  ;;  %v984_v9 = vmul.f32 %v1282_v53, %v976_v43  ;;  %v3920_v31 = vld [vmem:[#allocation55_spill] sm:$0xff]  ;;  %v3923_v61 = vld [vmem:[#allocation124_spill] sm:$0xff]  ;;  %v3926_v51 = vld [vmem:[#allocation90_spill] sm:$0xff] }
 0x12e   :  { %v985_v17 = vmul.f32 %v1283_v40, %v977_v49  ;;  %v986_v63 = vmul.f32 %v1284_v33, %v978_v21  ;;  %v987_v60 = vmul.f32 %v1285_v7, %v979_v10  ;;  %v988_v23 = vmul.f32 %v1286_v59, %v980_v26  ;;  %v3924_v33 = vld [vmem:[#allocation112_spill] sm:$0xff]  ;;  %v3927_v32 = vld [vmem:[#allocation91_spill] sm:$0xff]  ;;  %v3928_v49 = vld [vmem:[#allocation17_spill] sm:$0xff] }
 0x12f   :  { %v989_v29 = vadd.f32 %v981_v18, %v965_v24  ;;  %v990_v15 = vadd.f32 %v982_v4, %v966_v20  ;;  %v991_v56 = vadd.f32 %v983_v22, %v967_v41  ;;  %v992_v50 = vadd.f32 %v984_v9, %v968_v36  ;;  %v3929_v10 = vld [vmem:[#allocation18_spill] sm:$0xff]  ;;  %v3930_v18 = vld [vmem:[#allocation19_spill] sm:$0xff]  ;;  %v3931_v22 = vld [vmem:[#allocation20_spill] sm:$0xff] }
 0x130   :  { %v993_v54 = vadd.f32 %v985_v17, %v969_v47  ;;  %v994_v35 = vadd.f32 %v986_v63, %v970_v3  ;;  %v995_v2 = vadd.f32 %v987_v60, %v971_v42  ;;  %v996_v8 = vadd.f32 %v988_v23, %v972_v5  ;;  %v3925_v42 = vld [vmem:[#allocation120_spill] sm:$0xff]  ;;  %v3932_v60 = vld [vmem:[#allocation87_spill] sm:$0xff]  ;;  %v3933_v23 = vld [vmem:[#allocation21_spill] sm:$0xff] }
 0x131   :  { %v997_v1 = vmul.f32 %v989_v29, %v2743_v38  ;;  %v998_v0 = vmul.f32 %v990_v15, %v2746_v39  ;;  %v999_v13 = vmul.f32 %v991_v56, %v2749_v62  ;;  %v1000_v28 = vmul.f32 %v992_v50, %v2755_v27  ;;  %v3934_v50 = vld [vmem:[#allocation50_spill] sm:$0xff] }
 0x132   :  { %v1001_v19 = vmul.f32 %v993_v54, %v2758_v14  ;;  %v1002_v46 = vmul.f32 %v994_v35, %v2761_v6  ;;  %v1003_v24 = vmul.f32 %v995_v2, %v2767_v45  ;;  %v1004_v12 = vmul.f32 %v996_v8, %v2770_v30  ;;  %v3935_v54 = vld [vmem:[#allocation53_spill] sm:$0xff] }
 0x133   :  { %v1005_v48 = vsub.f32 %v2734_v52, %v997_v1  ;;  %v1006_v34 = vsub.f32 %v2737_v58, %v998_v0  ;;  %v1007_v38 = vsub.f32 %v2740_v37, %v999_v13  ;;  %v1008_v39 = vsub.f32 %v2777_v11, %v1000_v28  ;;  %v3936_v2 = vld [vmem:[#allocation93_spill] sm:$0xff]  ;;  %v3937_v0 = vld [vmem:[#allocation30_spill] sm:$0xff] }
 0x134   :  { %v1009_v62 = vsub.f32 %v3920_v31, %v1001_v19  ;;  %v1010_v27 = vsub.f32 %v3921_v57, %v1002_v46  ;;  %v1011_v14 = vsub.f32 %v3922_v16, %v1003_v24  ;;  %v1012_v6 = vsub.f32 %v3923_v61, %v1004_v12  ;;  %v3938_v46 = vld [vmem:[#allocation94_spill] sm:$0xff]  ;;  %v3939_v12 = vld [vmem:[#allocation31_spill] sm:$0xff] }
 0x135   :  { %v1013_v25 = vmul.f32 %v1005_v48, %v1005_v48  ;;  %v1014_v45 = vmul.f32 %v1006_v34, %v1006_v34  ;;  %v1015_v55 = vmul.f32 %v1007_v38, %v1007_v38  ;;  %v1016_v30 = vmul.f32 %v1008_v39, %v1008_v39  ;;  %v3940_v38 = vld [vmem:[#allocation86_spill] sm:$0xff]  ;;  %v3941_v31 = vld [vmem:[#allocation95_spill] sm:$0xff] }
 0x136   :  { %v1017_v53 = vmul.f32 %v1009_v62, %v1009_v62  ;;  %v1018_v52 = vmul.f32 %v1010_v27, %v1010_v27  ;;  %v1019_v40 = vmul.f32 %v1011_v14, %v1011_v14  ;;  %v1020_v58 = vmul.f32 %v1012_v6, %v1012_v6  ;;  %v3942_v62 = vld [vmem:[#allocation121_spill] sm:$0xff]  ;;  %v3943_v14 = vld [vmem:[#allocation22_spill] sm:$0xff] }
 0x137   :  { %v3200_v20 = vmul.f32 0.40528473, %v1013_v25  ;;  %v3202_v37 = vmul.f32 0.40528473, %v1014_v45  ;;  %v3204_v11 = vmul.f32 0.40528473, %v1015_v55  ;;  %v463_v7 = vmul.f32 %v3924_v33, %v3924_v33 }
 0x138   :  { %v3208_v41 = vmul.f32 0.40528473, %v1016_v30  ;;  %v3210_v36 = vmul.f32 0.40528473, %v1017_v53  ;;  %v3212_v59 = vmul.f32 0.40528473, %v1018_v52  ;;  %1418 = vrcp.f32 %v3932_v60 }
 0x139   :  { %v3214_v47 = vmul.f32 0.40528473, %v1019_v40  ;;  %v3216_v3 = vmul.f32 0.40528473, %v1020_v58  ;;  %v1029_v5 = vsub.f32 %v3200_v20, %v3925_v42  ;;  %v1030_v44 = vsub.f32 %v3202_v37, %v3926_v51  ;;  %v3944_v6 = vld [vmem:[#allocation37_spill] sm:$0xff]  ;;  %v3945_v25 = vld [vmem:[#allocation66_spill] sm:$0xff] }
 0x13a   :  { %v1031_v43 = vsub.f32 %v3204_v11, %v3927_v32  ;;  %v1032_v21 = vsub.f32 %v3208_v41, %v3928_v49  ;;  %v1033_v26 = vsub.f32 %v3210_v36, %v3929_v10  ;;  %v1034_v4 = vsub.f32 %v3212_v59, %v3930_v18  ;;  %v3946_v53 = vld [vmem:[#allocation96_spill] sm:$0xff]  ;;  %v3947_v40 = vld [vmem:[#allocation38_spill] sm:$0xff]  ;;  %v3948_v33 = vld [vmem:[#allocation101_spill] sm:$0xff] }
 0x13b   :  { %v1035_v9 = vsub.f32 %v3214_v47, %v3931_v22  ;;  %v1037_v17 = vadd.f32 1.0000001, %v1029_v5  ;;  %v1038_v63 = vadd.f32 1.0000001, %v1030_v44  ;;  %v1036_v29 = vsub.f32 %v3216_v3, %v3933_v23 }
 0x13c   :  { %v1039_v15 = vadd.f32 1.0000001, %v1031_v43  ;;  %v1040_v56 = vadd.f32 1.0000001, %v1032_v21  ;;  %1420 = vrcp.f32 %v3934_v50  ;;  %v464_v35 = vmul.f32 %v3935_v54, %v3935_v54  ;;  %v3949_v43 = vld [vmem:[#allocation39_spill] sm:$0xff]  ;;  %v3952_v50 = vld [vmem:[#allocation110_spill] sm:$0xff] }
 0x13d   :  { %v465_v8 = vmul.f32 %v3936_v2, %v3936_v2  ;;  %v1041_v1 = vadd.f32 1.0000001, %v1033_v26  ;;  %1422 = vrcp.f32 %v1037_v17  ;;  %v466_v13 = vmul.f32 %v3937_v0, %v3937_v0  ;;  %v3950_v26 = vld [vmem:[#allocation102_spill] sm:$0xff] }
 0x13e   :  { %v1042_v28 = vadd.f32 1.0000001, %v1034_v4  ;;  %1424 = vrcp.f32 %v1038_v63  ;;  %v1125_v19 = vlaneseq  ;;  %v467_v24 = vmul.f32 %v3938_v46, %v3938_v46  ;;  %v1419_v16 = vpop.eup %1418  ;;  %v3954_v46 = vld [vmem:[#allocation111_spill] sm:$0xff] }
 0x13f   :  { %v468_v48 = vmul.f32 %v3939_v12, %v3939_v12  ;;  %v1043_v34 = vadd.f32 1.0000001, %v1035_v9  ;;  %1426 = vrcp.f32 %v1039_v15  ;;  %v435_v39 = vadd.f32 1e-07, %v3940_v38  ;;  %v3951_v9 = vld [vmem:[#allocation40_spill] sm:$0xff] }
 0x140   :  { %v469_v57 = vadd.f32 %v3942_v62, %v3941_v31  ;;  %v1044_v27 = vadd.f32 1.0000001, %v1036_v29  ;;  %1428 = vrcp.f32 %v1040_v56  ;;  %v436_v61 = vadd.f32 1e-07, %v3943_v14  ;;  %v3955_v38 = vld [vmem:[#allocation52_spill] sm:$0xff] }
 0x141   :  { %v470_v45 = vadd.f32 %v3945_v25, %v3944_v6  ;;  %1430 = vrcp.f32 %v1041_v1  ;;  %v3252_v55 = vshrl.u32 %v1125_v19, 7  ;;  %v471_v52 = vadd.f32 %v463_v7, %v3946_v53  ;;  %v3953_v1 = vld [vmem:[#allocation51_spill] sm:$0xff] }
 0x142   :  { %v1421_v30 = vpop.eup %1420  ;;  %v472_v58 = vadd.f32 %v464_v35, %v3947_v40  ;;  %v473_v5 = vadd.f32 %v465_v8, %v3948_v33  ;;  %1432 = vrcp.f32 %v1042_v28  ;;  %v474_v21 = vadd.f32 %v466_v13, %v3949_v43 }
 0x143   :  { %v1423_v44 = vpop.eup %1422  ;;  %v3259_v4 = vadd.f32 %v467_v24, %v3950_v26  ;;  %v3262_v17 = vadd.f32 %v468_v48, %v3951_v9  ;;  %1434 = vrcp.f32 %v1043_v34  ;;  %v1069_v7 = vmul.f32 %v1419_v16, %v469_v57 }
 0x144   :  { %v1425_v63 = vpop.eup %1424  ;;  %1436 = vrcp.f32 %v1044_v27  ;;  %v1053_v60 = vmul.f32 %v1423_v44, %v3200_v20  ;;  %v3265_v29 = vand.u32 127, %v1125_v19  ;;  %v1070_v54 = vmul.f32 %v1421_v30, %v470_v45 }
 0x145   :  { %v1427_v15 = vpop.eup %1426  ;;  %v1054_v56 = vmul.f32 %v1425_v63, %v3202_v37  ;;  %1438 = vrcp.f32 %v3952_v50  ;;  %v3270_v35 = vadd.s32 8, %v3252_v55  ;;  %v3276_v13 = vadd.s32 16, %v3252_v55 }
 0x146   :  { %v1429_v2 = vpop.eup %1428  ;;  %v1055_v8 = vmul.f32 %v1427_v15, %v3204_v11  ;;  %1440 = vrcp.f32 %v3953_v1  ;;  %v1077_v0 = vmul.f32 %v1053_v60, %v3200_v20  ;;  %v3282_v12 = vadd.s32 24, %v3252_v55 }
 0x147   :  { %v1431_v28 = vpop.eup %1430  ;;  %v1056_v19 = vmul.f32 %v1429_v2, %v3208_v41  ;;  %1442 = vrcp.f32 %v3954_v46  ;;  %v1078_v24 = vmul.f32 %v1054_v56, %v3202_v37  ;;  %v3287_v20 = vadd.s32 32, %v3252_v55 }
 0x148   :  { %v1433_v48 = vpop.eup %1432  ;;  %v1057_v34 = vmul.f32 %v1431_v28, %v3210_v36  ;;  %1444 = vrcp.f32 %v3955_v38  ;;  %v1085_v31 = vadd.f32 %v1077_v0, %v1069_v7  ;;  %v3291_v16 = vadd.s32 40, %v3252_v55 }
 0x149   :  { %v1435_v62 = vpop.eup %1434  ;;  %v1058_v57 = vmul.f32 %v1433_v48, %v3212_v59  ;;  %1446 = vrcp.f32 %v435_v39  ;;  %v1086_v27 = vadd.f32 %v1078_v24, %v1070_v54  ;;  %v1079_v6 = vmul.f32 %v1055_v8, %v3204_v11 }
 0x14a   :  { %v1437_v37 = vpop.eup %1436  ;;  %v1059_v14 = vmul.f32 %v1435_v62, %v3214_v47  ;;  %1448 = vrcp.f32 %v436_v61  ;;  %v1093_v25 = vsub.f32 %v3925_v42, %v1085_v31  ;;  %v1080_v53 = vmul.f32 %v1056_v19, %v3208_v41 }
 0x14b   :  { %v1439_v45 = vpop.eup %1438  ;;  %v1060_v30 = vmul.f32 %v1437_v37, %v3216_v3  ;;  %v1094_v40 = vsub.f32 %v3926_v51, %v1086_v27  ;;  %v3300_v39 = vadd.s32 48, %v3252_v55  ;;  %v1081_v43 = vmul.f32 %v1057_v34, %v3210_v36 }
 0x14c   :  { %v1441_v33 = vpop.eup %1440  ;;  %v1071_v44 = vmul.f32 %v1439_v45, %v471_v52  ;;  %v3303_v26 = vclamps-f32 %v1093_v25, 1.0  ;;  %v1137_v11 = vmul.u32 128, %v3252_v55  ;;  %v1082_v9 = vmul.f32 %v1058_v57, %v3212_v59 }
 0x14d   :  { %v1443_v61 = vpop.eup %1442  ;;  %v1072_v42 = vmul.f32 %v1441_v33, %v472_v58  ;;  %v1288_v63 = vclamps-f32 %v1094_v40, 1.0  ;;  %v1138_v41 = vmul.u32 128, %v3270_v35  ;;  %v1083_v7 = vmul.f32 %v1059_v14, %v3214_v47 }
 0x14e   :  { %v1445_v60 = vpop.eup %1444  ;;  %v1073_v51 = vmul.f32 %v1443_v61, %v473_v5  ;;  %v1087_v15 = vadd.f32 %v1079_v6, %v1071_v44  ;;  %1117 = vst [vmem:[#allocation8] sm:$0xff] %v3303_v26  ;;  %v1139_v36 = vmul.u32 128, %v3276_v13  ;;  %v1084_v50 = vmul.f32 %v1060_v30, %v3216_v3 }
 0x14f   :  { %v1447_v52 = vpop.eup %1446  ;;  %v1074_v56 = vmul.f32 %v1445_v60, %v474_v21  ;;  %v1088_v54 = vadd.f32 %v1080_v53, %v1072_v42  ;;  %1118 = vst [vmem:[#allocation8 + $0x8] sm:$0xff] %v1288_v63  ;;  %v1140_v59 = vmul.u32 128, %v3282_v12  ;;  %v1141_v47 = vmul.u32 128, %v3287_v20 }
 0x150   :  { %v1449_v58 = vpop.eup %1448  ;;  %v1075_v35 = vmul.f32 %v1447_v52, %v3259_v4  ;;  %v1089_v2 = vadd.f32 %v1081_v43, %v1073_v51  ;;  %v1095_v5 = vsub.f32 %v3927_v32, %v1087_v15  ;;  %v1154_v21 = vadd.s32 %v1137_v11, %v3265_v29 }
 0x151   :  { %v1076_v8 = vmul.f32 %v1449_v58, %v3262_v17  ;;  %v1090_v1 = vadd.f32 %v1082_v9, %v1074_v56  ;;  %v1096_v0 = vsub.f32 %v3928_v49, %v1088_v54  ;;  %v1155_v19 = vadd.s32 %v1138_v41, %v3265_v29 }
 0x152   :  { %v1091_v3 = vadd.f32 %v1083_v7, %v1075_v35  ;;  %v1097_v13 = vsub.f32 %v3929_v10, %v1089_v2  ;;  %v1289_v28 = vclamps-f32 %v1095_v5, 1.0  ;;  %v1156_v32 = vadd.s32 %v1139_v36, %v3265_v29 }
 0x153   :  { %v1092_v46 = vadd.f32 %v1084_v50, %v1076_v8  ;;  %v1098_v4 = vsub.f32 %v3930_v18, %v1090_v1  ;;  %v1290_v24 = vclamps-f32 %v1096_v0, 1.0  ;;  %v1133_v49 = vadd.s32 56, %v3252_v55 }
 0x154   :  { %v1099_v12 = vsub.f32 %v3931_v22, %v1091_v3  ;;  %v1291_v17 = vclamps-f32 %v1097_v13, 1.0  ;;  %1119 = vst [vmem:[#allocation8 + $0x10] sm:$0xff] %v1289_v28  ;;  %v1142_v10 = vmul.u32 128, %v3291_v16  ;;  %v1157_v38 = vadd.s32 %v1140_v59, %v3265_v29 }
 0x155   :  { %v1100_v48 = vsub.f32 %v3933_v23, %v1092_v46  ;;  %v1292_v34 = vclamps-f32 %v1098_v4, 1.0  ;;  %1120 = vst [vmem:[#allocation8 + $0x18] sm:$0xff] %v1290_v24  ;;  %v1143_v18 = vmul.u32 128, %v3300_v39  ;;  %v1158_v20 = vadd.s32 %v1141_v47, %v3265_v29 }
 0x156   :  { %v1293_v31 = vclamps-f32 %v1099_v12, 1.0  ;;  %1121 = vst [vmem:[#allocation8 + $0x20] sm:$0xff] %v1291_v17  ;;  %vm1162_vm14 = vcmp.lt.s32.totalorder %v1154_v21, 37  ;;  %vm1163_vm5 = vcmp.lt.s32.totalorder %v1155_v19, 37  ;;  %vm1164_vm15 = vcmp.lt.s32.totalorder %v1156_v32, 37 }
 0x157   :  { %v1294_v22 = vclamps-f32 %v1100_v48, 1.0  ;;  %1122 = vst [vmem:[#allocation8 + $0x28] sm:$0xff] %v1292_v34  ;;  %v1170_v55 = vsub.f32 1.0, %v3303_v26  ;;  %v1171_v23 = vsub.f32 1.0, %v1288_v63  ;;  %v1172_v62 = vsub.f32 1.0, %v1289_v28 }
 0x158   :  { %1123 = vst [vmem:[#allocation8 + $0x30] sm:$0xff] %v1293_v31  ;;  %v1173_v57 = vsub.f32 1.0, %v1290_v24  ;;  %v1144_v27 = vmul.u32 128, %v1133_v49  ;;  %v1159_v16 = vadd.s32 %v1142_v10, %v3265_v29  ;;  %vm1165_vm8 = vcmp.lt.s32.totalorder %v1157_v38, 37 }
 0x159   :  { %1124 = vst [vmem:[#allocation8 + $0x38] sm:$0xff] %v1294_v22  ;;  %v1178_v37 = vsel %vm1162_vm14, %v1170_v55, 0.0  ;;  %v1174_v14 = vsub.f32 1.0, %v1291_v17  ;;  %v1179_v6 = vsel %vm1163_vm5, %v1171_v23, 0.0  ;;  %v1180_v25 = vsel %vm1164_vm15, %v1172_v62, 0.0 }
 0x15a   :  { %v1160_v45 = vadd.s32 %v1143_v18, %v3265_v29  ;;  %vm1166_vm1 = vcmp.lt.s32.totalorder %v1158_v20, 37  ;;  %v1186_v30 = vadd.f32 %v1179_v6, %v1178_v37  ;;  %v1175_v53 = vsub.f32 1.0, %v1292_v34  ;;  %1216 = dma.vmem_to_hbm [thread:$0]  %s1209_s1, 1024, %s1211_s26, [#allocation4], %s1551_s20, %s1551_s20, %s1552_s21  }
 0x15b   :  { %v1181_v40 = vsel %vm1165_vm8, %v1173_v57, 0.0  ;;  %v1161_v39 = vadd.s32 %v1144_v27, %v3265_v29  ;;  %vm1167_vm11 = vcmp.lt.s32.totalorder %v1159_v16, 37  ;;  %v1176_v44 = vsub.f32 1.0, %v1293_v31 }
 0x15c   :  { %v1187_v33 = vadd.f32 %v1186_v30, %v1180_v25  ;;  %v1182_v43 = vsel %vm1166_vm1, %v1174_v14, 0.0  ;;  %vm1168_vm2 = vcmp.lt.s32.totalorder %v1160_v45, 37  ;;  %v1177_v11 = vsub.f32 1.0, %v1294_v22 }
 0x15d   :  { %v1183_v61 = vsel %vm1167_vm11, %v1175_v53, 0.0  ;;  %vm1169_vm4 = vcmp.lt.s32.totalorder %v1161_v39, 37  ;;  %v1184_v9 = vsel %vm1168_vm2, %v1176_v44, 0.0 }
 0x15e   :  { %v1188_v26 = vadd.f32 %v1187_v33, %v1181_v40  ;;  %v1185_v41 = vsel %vm1169_vm4, %v1177_v11, 0.0 }
 0x160   :  { %v1189_v42 = vadd.f32 %v1188_v26, %v1182_v43 }
 0x162   :  { %v1190_v63 = vadd.f32 %v1189_v42, %v1183_v61 }
 0x164   :  { %v1191_v60 = vadd.f32 %v1190_v63, %v1184_v9 }
 0x166   :  { %v1192_v51 = vadd.f32 %v1191_v60, %v1185_v41 }
 0x168   :  { %1193 = vadd.xlane.f32.xlu0 %v1192_v51 }
 0x1db   :  { %v1194_v29 = vpop.xlane.xlu0 %1193 }
 0x1dc   :  { %v1195_v7 = vrot.slane %v1194_v29, 4 }
 0x1de   :  { %v1196_v15 = vadd.f32 %v1195_v7, %v1194_v29 }
 0x1e0   :  { %v1197_v36 = vrot.slane %v1196_v15, 2 }
 0x1e2   :  { %v1198_v52 = vadd.f32 %v1197_v36, %v1196_v15 }
 0x1e4   :  { %v1199_v56 = vrot.slane %v1198_v52, 1 }
 0x1e6   :  { %v1200_v50 = vadd.f32 %v1199_v56, %v1198_v52 }
 0x1e8   :  { %1295 = vpush %v1200_v50 }
 0x219   :  { %s1296_s2 = spop %1295 }
 0x21a   :  { %1203 = sst [smem:[#allocation9]] %s1296_s2 }
 0x21b   :  { %1225 = dma.smem_to_hbm %s1558_s30, 16, %s1223_s29, [#allocation5]  }
 0x21c   :  { %1546 = dma.done.wait [#allocation4], 1024  }
 0x21d   :  { %1547 = vsyncadd [#allocation4], 4294966272 }
 0x21e   :  { %1548 = dma.done.wait [#allocation5], 16  }
 0x21f   :  { %1549 = vsyncadd [#allocation5], 4294967280 }
 0x220   :  { %1234 = sfence }
 0x221   :  { %1235 = vsyncpa [#allocation3], 1 }
 0x222   :  { %1236 = vsyncpa [#allocation7], 1 }
 0x223   :  { %1237 = vsyncpa [#allocation4], 1 }
 0x224   :  { %1238 = vsyncpa [#allocation5], 1 }

</bundles_post_ra>
